<compile_context>
chip_gen: v5e
topology: v5e:2x2
jax: 0.10.0
libtpu: 0.0.40
codegen_flags: <defaults>
</compile_context>

<pallas_src>
import functools

import jax
import jax.numpy as jnp
from jax.experimental import pallas as pl
from jax.experimental.pallas import tpu as pltpu


def _swish(x):
    # swish(x) = x * sigmoid(x) = x * 0.5 * (tanh(x/2) + 1): single EUP op.
    return x * (0.5 * (jnp.tanh(0.5 * x) + 1.0))


def _layer_kernel(geo_a_ref, geo_b_ref, feat_ref, w0_ref, w1_ref, w2_ref,
                  w3_ref, sel_ref, out_ref, acc_ref, *, ta, tb, c_in, c_out,
                  nb, min_radius, step, gamma, apply_act):
    ib = pl.program_id(2)

    @pl.when(ib == 0)
    def _init():
        acc_ref[...] = jnp.zeros_like(acc_ref)

    ga = geo_a_ref[0].astype(jnp.float32)      # [ta, 3]   output points of this tile
    gb = geo_b_ref[0].astype(jnp.float32)      # [tb, 3]   neighbor points of this tile
    f = feat_ref[0].astype(jnp.float32)        # [tb, c_in] neighbor features

    # pairwise relative vectors (x_b - x_a) for this (a-tile, b-tile) block,
    # flattened over pairs p = a*tb + b (leading-dims-only reshape -> free).
    p = ta * tb
    diff = (jnp.broadcast_to(gb[None, :, :], (ta, tb, 3))
            - jnp.broadcast_to(ga[:, None, :], (ta, tb, 3))).reshape(p, 3)
    d = jnp.sqrt(jnp.sum(diff * diff, axis=1, keepdims=True))          # [p, 1]

    # GaussianRadialModel basis fused with the first FC layer on the VPU/EUP:
    #   x0[p, H] = sum_k exp(-(gamma*(d - c_k))^2) * w0[k, :]
    # Centers are compile-time Python floats (no captured array constants).
    # A K=nb(=3) MXU matmul would cost a full M=p push pass for ~2% useful
    # MACs; the VPU has slack under the MXU-bound matmuls below.
    x = None
    for k in range(nb):
        center = min_radius + k * step
        g = jnp.exp(-jnp.square(gamma * (d - center)))                 # [p, 1]
        term = g * w0_ref[k:k + 1, :].astype(jnp.float32)              # [p, H]
        x = term if x is None else x + term
    x = _swish(x)
    # TODO(synk): e3nn's exact Y_0 / Clebsch-Gordan normalization constants are
    #             folded to 1.0 (only lmax=0 scalar paths exist here).

    # Remaining radial FC layers (swish, no bias, 1/sqrt(fan_in) folded into
    # the weights).  bf16 operands at the MXU, f32 accumulation.
    bf16 = jnp.bfloat16
    x = _swish(jnp.dot(x.astype(bf16), w1_ref[...],
                       preferred_element_type=jnp.float32))
    x = _swish(jnp.dot(x.astype(bf16), w2_ref[...],
                       preferred_element_type=jnp.float32))
    R = jnp.dot(x.astype(bf16), w3_ref[...],
                preferred_element_type=jnp.float32)                    # [p, c_out*c_in]

    # Convolution contribution of this neighbor tile:
    #   acc[a, i] += sum_{b in tile} sum_j R[(a,b), i*c_in+j] * f[b, j]
    q = c_out * c_in
    fexp = jnp.concatenate([f] * c_out, axis=1)                        # [tb, q] (tiny)
    pr = R.reshape(ta, tb, q) * fexp[None, :, :]                       # [ta, tb, q]
    psum = jnp.sum(pr, axis=1)                                         # [ta, q]
    # group the (i,j) path lanes into c_out outputs; sel already carries the
    # 1/sqrt(n_norm) convolution normalization.  M=ta only -> cheap MXU matmul.
    acc_ref[...] += jnp.dot(psum, sel_ref[...],
                            preferred_element_type=jnp.float32)        # [ta, c_out]

    @pl.when(ib == pl.num_programs(2) - 1)
    def _finalize():
        out = acc_ref[...]
        if apply_act:
            # GatedBlock(Rs_out, swish, sigmoid) with scalar-only Rs == swish.
            out = _swish(out)
        out_ref[0] = out.astype(out_ref.dtype)


def conv_gated_layer(features, geometry, weights, sel, c_out, *,
                     min_radius, step, gamma, nb, apply_act, ta, tb):
    B, N, c_in = features.shape
    assert N % ta == 0 and N % tb == 0, (N, ta, tb)
    w0, w1, w2, w3 = weights
    kern = functools.partial(
        _layer_kernel, ta=ta, tb=tb, c_in=c_in, c_out=c_out, nb=nb,
        min_radius=float(min_radius), step=float(step), gamma=float(gamma),
        apply_act=apply_act)
    grid = (B, N // ta, N // tb)
    return pl.pallas_call(
        kern,
        out_shape=jax.ShapeDtypeStruct((B, N, c_out), jnp.float32),
        grid_spec=pltpu.PrefetchScalarGridSpec(
            num_scalar_prefetch=0,
            grid=grid,
            in_specs=[
                pl.BlockSpec((1, ta, 3), lambda b, ia, ib: (b, ia, 0)),   # geometry (a tile)
                pl.BlockSpec((1, tb, 3), lambda b, ia, ib: (b, ib, 0)),   # geometry (b tile)
                pl.BlockSpec((1, tb, c_in), lambda b, ia, ib: (b, ib, 0)),
                pl.BlockSpec(w0.shape, lambda b, ia, ib: (0, 0)),
                pl.BlockSpec(w1.shape, lambda b, ia, ib: (0, 0)),
                pl.BlockSpec(w2.shape, lambda b, ia, ib: (0, 0)),
                pl.BlockSpec(w3.shape, lambda b, ia, ib: (0, 0)),
                pl.BlockSpec(sel.shape, lambda b, ia, ib: (0, 0)),
            ],
            out_specs=pl.BlockSpec((1, ta, c_out), lambda b, ia, ib: (b, ia, 0)),
            scratch_shapes=[pltpu.VMEM((ta, c_out), jnp.float32)],
        ),
        compiler_params=pltpu.CompilerParams(
            dimension_semantics=("parallel", "parallel", "arbitrary"),
            # tiles are sized so the live set stays well under this; keep
            # ta*tb <= 8192 on v7x (64 MiB physical VMEM), larger OK on v5e/v6e.
            vmem_limit_bytes=64 * 1024 * 1024),
    )(geometry, geometry, features, w0, w1, w2, w3, sel)


def _round_up(x, m):
    return ((x + m - 1) // m) * m


def pad_weights(ws, lane=128):
    # Zero-pad the radial hidden width to a multiple of 128 lanes (exact:
    # swish(0)=0 and zero rows/cols contribute nothing).  w0 feeds the
    # VPU path (kept f32); w1/w2/w3 feed the MXU (bf16 operands, f32 accum
    # via preferred_element_type).
    w0, w1, w2, w3 = ws
    h = w1.shape[0]
    hp = _round_up(h, lane)
    w0p = jnp.pad(w0, ((0, 0), (0, hp - h))).astype(jnp.float32)
    w1p = jnp.pad(w1, ((0, hp - h), (0, hp - h))).astype(jnp.bfloat16)
    w2p = jnp.pad(w2, ((0, hp - h), (0, hp - h))).astype(jnp.bfloat16)
    w3p = jnp.pad(w3, ((0, hp - h), (0, 0))).astype(jnp.bfloat16)
    return w0p, w1p, w2p, w3p


def init_radial_weights(key, nb, h, n_paths, radial_layers):
    # e3nn FC: weights ~ N(0,1), divided by sqrt(fan_in) in forward (folded here).
    dims = [nb] + [h] * radial_layers + [n_paths]
    keys = jax.random.split(key, len(dims) - 1)
    return [jax.random.normal(k, (d_in, d_out), jnp.float32) / jnp.sqrt(d_in)
            for k, d_in, d_out in zip(keys, dims[:-1], dims[1:])]


def gated_conv_network(features, geometry, layer_weights, layer_dims, *,
                       max_radius=1.0, min_radius=0.0, number_of_basis=3,
                       ta=None, tb=None):
    # forward(input, geometry): n_norm defaults to N = geometry.shape[-2]
    N = geometry.shape[-2]
    n_norm = N
    if ta is None:
        ta = min(128, N)
    if tb is None:
        tb = min(64, N)
    step = (max_radius - min_radius) / (number_of_basis - 1)
    gamma = 1.0 / step
    inv_sqrt_n = 1.0 / (n_norm ** 0.5)

    out = features
    n_layers = len(layer_weights)
    for i, (ws, c_out) in enumerate(zip(layer_weights, layer_dims[1:])):
        c_in = layer_dims[i]
        # selection matrix grouping the c_out*c_in path lanes into c_out outputs,
        # with the 1/sqrt(n_norm) normalization folded in (built outside the
        # kernel and passed as an input -> no captured constants, no per-step iota).
        rows = (jnp.arange(c_out * c_in) // c_in)[:, None]
        sel = (rows == jnp.arange(c_out)[None, :]).astype(jnp.float32) * inv_sqrt_n
        apply_act = i < n_layers - 1          # last layer: Convolution only
        out = conv_gated_layer(out, geometry, pad_weights(ws), sel,
                               c_out, min_radius=min_radius, step=step,
                               gamma=gamma, nb=number_of_basis,
                               apply_act=apply_act, ta=ta, tb=tb)
    return out


if __name__ == "__main__":
    key = jax.random.PRNGKey(0)
    kf, kg, kp = jax.random.split(key, 3)

    B, N = 2, 16                      # batch, number of points
    C_in, C_hid, C_out = 4, 8, 4      # Rs_in / Rs_hidden / Rs_out scalar multiplicities (lmax=0)
    LAYERS = 3                        # module default layers=3
    NB = 3                            # number_of_basis
    H = 100                           # GaussianRadialModel default h=100 (padded to 128 lanes)
    RADIAL_LAYERS = 3                 # radial_layers
    TA = TB = 8                       # small demo tiles (exercise the b-tile accumulation)

    features = jax.random.normal(kf, (B, N, C_in), jnp.float32)
    geometry = 0.4 * jax.random.normal(kg, (B, N, 3), jnp.float32)

    layer_dims = [C_in] + [C_hid] * LAYERS + [C_out]
    pkeys = jax.random.split(kp, len(layer_dims) - 1)
    layer_weights = [
        init_radial_weights(pkeys[i], NB, H, layer_dims[i + 1] * layer_dims[i],
                            RADIAL_LAYERS)
        for i in range(len(layer_dims) - 1)
    ]

    out = gated_conv_network(features, geometry, layer_weights, layer_dims,
                             ta=TA, tb=TB)
    out = jax.block_until_ready(out)
    assert out.shape == (B, N, C_out), out.shape
    assert bool(jnp.all(jnp.isfinite(out)))
    print("KERNEL_OK")
</pallas_src>

<mosaic_0001>
module attributes {stable_mosaic.version = 11 : i64} {
  func.func @_layer_kernel(%arg0: i32, %arg1: i32, %arg2: i32, %arg3: memref<1x8x3xf32, #tpu.memory_space<vmem>>, %arg4: memref<1x8x3xf32, #tpu.memory_space<vmem>>, %arg5: memref<1x8x4xf32, #tpu.memory_space<vmem>>, %arg6: memref<3x128xf32, #tpu.memory_space<vmem>>, %arg7: memref<128x128xbf16, #tpu.memory_space<vmem>>, %arg8: memref<128x128xbf16, #tpu.memory_space<vmem>>, %arg9: memref<128x32xbf16, #tpu.memory_space<vmem>>, %arg10: memref<32x8xf32, #tpu.memory_space<vmem>>, %arg11: memref<1x8x8xf32, #tpu.memory_space<vmem>>, %arg12: memref<8x8xf32, #tpu.memory_space<vmem>>) attributes {dimension_semantics = [#tpu.dimension_semantics<parallel>, #tpu.dimension_semantics<parallel>, #tpu.dimension_semantics<arbitrary>], iteration_bounds = array<i64: 2, 2, 2>, scalar_prefetch = 0 : i64, scratch_operands = 1 : i64, tpu.core_type = #tpu.core_type<tc>, window_params = [{transform_indices = @transform_0, window_bounds = array<i64: 1, 8, 3>}, {transform_indices = @transform_1, window_bounds = array<i64: 1, 8, 3>}, {transform_indices = @transform_2, window_bounds = array<i64: 1, 8, 4>}, {pipeline_mode = #tpu.pipeline_mode<synchronous>, transform_indices = @transform_3, window_bounds = array<i64: 3, 128>}, {pipeline_mode = #tpu.pipeline_mode<synchronous>, transform_indices = @transform_4, window_bounds = array<i64: 128, 128>}, {pipeline_mode = #tpu.pipeline_mode<synchronous>, transform_indices = @transform_5, window_bounds = array<i64: 128, 128>}, {pipeline_mode = #tpu.pipeline_mode<synchronous>, transform_indices = @transform_6, window_bounds = array<i64: 128, 32>}, {pipeline_mode = #tpu.pipeline_mode<synchronous>, transform_indices = @transform_7, window_bounds = array<i64: 32, 8>}, {transform_indices = @transform_8, window_bounds = array<i64: 1, 8, 8>}]} {
    %c0_i32 = arith.constant 0 : i32
    %0 = arith.cmpi eq, %arg2, %c0_i32 : i32
    %1 = arith.extui %0 : i1 to i32
    %c0_i32_0 = arith.constant 0 : i32
    %2 = arith.cmpi ne, %1, %c0_i32_0 : i32
    scf.if %2 {
      %cst_49 = arith.constant 0.000000e+00 : f32
      %106 = vector.broadcast %cst_49 : f32 to vector<8x8xf32>
      %c0_50 = arith.constant 0 : index
      %c0_51 = arith.constant 0 : index
      %107 = vector.load %arg12[%c0_50, %c0_51] : memref<8x8xf32, #tpu.memory_space<vmem>>, vector<8x8xf32>
      tpu.vector_store %arg12[%c0_50, %c0_51], %106 {strides = array<i32>} : memref<8x8xf32, #tpu.memory_space<vmem>>, vector<8x8xf32>,
    } else {
    }
    %c0 = arith.constant 0 : index
    %c0_1 = arith.constant 0 : index
    %c0_2 = arith.constant 0 : index
    %3 = vector.load %arg3[%c0, %c0_1, %c0_2] : memref<1x8x3xf32, #tpu.memory_space<vmem>>, vector<1x8x3xf32>
    %4 = vector.shape_cast %3 : vector<1x8x3xf32> to vector<8x3xf32>
    %c0_3 = arith.constant 0 : index
    %c0_4 = arith.constant 0 : index
    %c0_5 = arith.constant 0 : index
    %5 = vector.load %arg4[%c0_3, %c0_4, %c0_5] : memref<1x8x3xf32, #tpu.memory_space<vmem>>, vector<1x8x3xf32>
    %6 = vector.shape_cast %5 : vector<1x8x3xf32> to vector<8x3xf32>
    %c0_6 = arith.constant 0 : index
    %c0_7 = arith.constant 0 : index
    %c0_8 = arith.constant 0 : index
    %7 = vector.load %arg5[%c0_6, %c0_7, %c0_8] : memref<1x8x4xf32, #tpu.memory_space<vmem>>, vector<1x8x4xf32>
    %8 = vector.shape_cast %7 : vector<1x8x4xf32> to vector<8x4xf32>
    %9 = vector.shape_cast %6 : vector<8x3xf32> to vector<1x8x3xf32>
    %10 = vector.shape_cast %9 : vector<1x8x3xf32> to vector<1x8x3xf32>
    %11 = vector.broadcast %10 : vector<1x8x3xf32> to vector<8x8x3xf32>
    %12 = vector.shape_cast %4 : vector<8x3xf32> to vector<8x1x3xf32>
    %13 = vector.shape_cast %12 : vector<8x1x3xf32> to vector<8x1x3xf32>
    %14 = vector.broadcast %13 : vector<8x1x3xf32> to vector<8x8x3xf32>
    %15 = arith.subf %11, %14 : vector<8x8x3xf32>
    %16 = vector.shape_cast %15 : vector<8x8x3xf32> to vector<64x3xf32>
    %17 = arith.mulf %16, %16 : vector<64x3xf32>
    %cst = arith.constant dense<0.000000e+00> : vector<64xf32>
    %18 = vector.multi_reduction <add>, %17, %cst [1] : vector<64x3xf32> to vector<64xf32>
    %19 = vector.shape_cast %18 : vector<64xf32> to vector<64x1xf32>
    %20 = math.sqrt %19 : vector<64x1xf32>
    %cst_9 = arith.constant 0.000000e+00 : f32
    %21 = vector.broadcast %cst_9 : f32 to vector<64x1xf32>
    %22 = arith.subf %20, %21 : vector<64x1xf32>
    %cst_10 = arith.constant 2.000000e+00 : f32
    %23 = vector.broadcast %cst_10 : f32 to vector<64x1xf32>
    %24 = arith.mulf %23, %22 : vector<64x1xf32>
    %25 = arith.mulf %24, %24 : vector<64x1xf32>
    %cst_11 = arith.constant 0.000000e+00 : f32
    %26 = vector.broadcast %cst_11 : f32 to vector<64x1xf32>
    %27 = arith.subf %26, %25 : vector<64x1xf32>
    %28 = math.exp %27 : vector<64x1xf32>
    %c0_12 = arith.constant 0 : index
    %c0_13 = arith.constant 0 : index
    %29 = vector.load %arg6[%c0_12, %c0_13] : memref<3x128xf32, #tpu.memory_space<vmem>>, vector<1x128xf32>
    %30 = vector.broadcast %28 : vector<64x1xf32> to vector<64x128xf32>
    %31 = vector.broadcast %29 : vector<1x128xf32> to vector<64x128xf32>
    %32 = arith.mulf %30, %31 : vector<64x128xf32>
    %cst_14 = arith.constant 5.000000e-01 : f32
    %33 = vector.broadcast %cst_14 : f32 to vector<64x1xf32>
    %34 = arith.subf %20, %33 : vector<64x1xf32>
    %cst_15 = arith.constant 2.000000e+00 : f32
    %35 = vector.broadcast %cst_15 : f32 to vector<64x1xf32>
    %36 = arith.mulf %35, %34 : vector<64x1xf32>
    %37 = arith.mulf %36, %36 : vector<64x1xf32>
    %cst_16 = arith.constant 0.000000e+00 : f32
    %38 = vector.broadcast %cst_16 : f32 to vector<64x1xf32>
    %39 = arith.subf %38, %37 : vector<64x1xf32>
    %40 = math.exp %39 : vector<64x1xf32>
    %c1 = arith.constant 1 : index
    %c0_17 = arith.constant 0 : index
    %41 = vector.load %arg6[%c1, %c0_17] : memref<3x128xf32, #tpu.memory_space<vmem>>, vector<1x128xf32>
    %42 = vector.broadcast %40 : vector<64x1xf32> to vector<64x128xf32>
    %43 = vector.broadcast %41 : vector<1x128xf32> to vector<64x128xf32>
    %44 = arith.mulf %42, %43 : vector<64x128xf32>
    %45 = arith.addf %32, %44 : vector<64x128xf32>
    %cst_18 = arith.constant 1.000000e+00 : f32
    %46 = vector.broadcast %cst_18 : f32 to vector<64x1xf32>
    %47 = arith.subf %20, %46 : vector<64x1xf32>
    %cst_19 = arith.constant 2.000000e+00 : f32
    %48 = vector.broadcast %cst_19 : f32 to vector<64x1xf32>
    %49 = arith.mulf %48, %47 : vector<64x1xf32>
    %50 = arith.mulf %49, %49 : vector<64x1xf32>
    %cst_20 = arith.constant 0.000000e+00 : f32
    %51 = vector.broadcast %cst_20 : f32 to vector<64x1xf32>
    %52 = arith.subf %51, %50 : vector<64x1xf32>
    %53 = math.exp %52 : vector<64x1xf32>
    %c2 = arith.constant 2 : index
    %c0_21 = arith.constant 0 : index
    %54 = vector.load %arg6[%c2, %c0_21] : memref<3x128xf32, #tpu.memory_space<vmem>>, vector<1x128xf32>
    %55 = vector.broadcast %53 : vector<64x1xf32> to vector<64x128xf32>
    %56 = vector.broadcast %54 : vector<1x128xf32> to vector<64x128xf32>
    %57 = arith.mulf %55, %56 : vector<64x128xf32>
    %58 = arith.addf %45, %57 : vector<64x128xf32>
    %cst_22 = arith.constant 5.000000e-01 : f32
    %59 = vector.broadcast %cst_22 : f32 to vector<64x128xf32>
    %60 = arith.mulf %59, %58 : vector<64x128xf32>
    %61 = math.tanh %60 : vector<64x128xf32>
    %cst_23 = arith.constant 1.000000e+00 : f32
    %62 = vector.broadcast %cst_23 : f32 to vector<64x128xf32>
    %63 = arith.addf %61, %62 : vector<64x128xf32>
    %cst_24 = arith.constant 5.000000e-01 : f32
    %64 = vector.broadcast %cst_24 : f32 to vector<64x128xf32>
    %65 = arith.mulf %64, %63 : vector<64x128xf32>
    %66 = arith.mulf %58, %65 : vector<64x128xf32>
    %67 = arith.truncf %66 : vector<64x128xf32> to vector<64x128xbf16>
    %c0_25 = arith.constant 0 : index
    %c0_26 = arith.constant 0 : index
    %68 = vector.load %arg7[%c0_25, %c0_26] : memref<128x128xbf16, #tpu.memory_space<vmem>>, vector<128x128xbf16>
    %cst_27 = arith.constant dense<0.000000e+00> : vector<64x128xf32>
    %69 = tpu.matmul %67, %68, %cst_27 {dimension_numbers = #tpu.dot_dimension_numbers<[1], [0], [0], [1], [0, 0, 1, 1], [], []>} : vector<64x128xbf16>, vector<128x128xbf16>, vector<64x128xf32> -> vector<64x128xf32>
    %cst_28 = arith.constant 5.000000e-01 : f32
    %70 = vector.broadcast %cst_28 : f32 to vector<64x128xf32>
    %71 = arith.mulf %70, %69 : vector<64x128xf32>
    %72 = math.tanh %71 : vector<64x128xf32>
    %cst_29 = arith.constant 1.000000e+00 : f32
    %73 = vector.broadcast %cst_29 : f32 to vector<64x128xf32>
    %74 = arith.addf %72, %73 : vector<64x128xf32>
    %cst_30 = arith.constant 5.000000e-01 : f32
    %75 = vector.broadcast %cst_30 : f32 to vector<64x128xf32>
    %76 = arith.mulf %75, %74 : vector<64x128xf32>
    %77 = arith.mulf %69, %76 : vector<64x128xf32>
    %78 = arith.truncf %77 : vector<64x128xf32> to vector<64x128xbf16>
    %c0_31 = arith.constant 0 : index
    %c0_32 = arith.constant 0 : index
    %79 = vector.load %arg8[%c0_31, %c0_32] : memref<128x128xbf16, #tpu.memory_space<vmem>>, vector<128x128xbf16>
    %cst_33 = arith.constant dense<0.000000e+00> : vector<64x128xf32>
    %80 = tpu.matmul %78, %79, %cst_33 {dimension_numbers = #tpu.dot_dimension_numbers<[1], [0], [0], [1], [0, 0, 1, 1], [], []>} : vector<64x128xbf16>, vector<128x128xbf16>, vector<64x128xf32> -> vector<64x128xf32>
    %cst_34 = arith.constant 5.000000e-01 : f32
    %81 = vector.broadcast %cst_34 : f32 to vector<64x128xf32>
    %82 = arith.mulf %81, %80 : vector<64x128xf32>
    %83 = math.tanh %82 : vector<64x128xf32>
    %cst_35 = arith.constant 1.000000e+00 : f32
    %84 = vector.broadcast %cst_35 : f32 to vector<64x128xf32>
    %85 = arith.addf %83, %84 : vector<64x128xf32>
    %cst_36 = arith.constant 5.000000e-01 : f32
    %86 = vector.broadcast %cst_36 : f32 to vector<64x128xf32>
    %87 = arith.mulf %86, %85 : vector<64x128xf32>
    %88 = arith.mulf %80, %87 : vector<64x128xf32>
    %89 = arith.truncf %88 : vector<64x128xf32> to vector<64x128xbf16>
    %c0_37 = arith.constant 0 : index
    %c0_38 = arith.constant 0 : index
    %90 = vector.load %arg9[%c0_37, %c0_38] : memref<128x32xbf16, #tpu.memory_space<vmem>>, vector<128x32xbf16>
    %cst_39 = arith.constant dense<0.000000e+00> : vector<64x32xf32>
    %91 = tpu.matmul %89, %90, %cst_39 {dimension_numbers = #tpu.dot_dimension_numbers<[1], [0], [0], [1], [0, 0, 1, 1], [], []>} : vector<64x128xbf16>, vector<128x32xbf16>, vector<64x32xf32> -> vector<64x32xf32>
    %92 = tpu.concatenate %8, %8, %8, %8, %8, %8, %8, %8 in 1 : vector<8x4xf32>, vector<8x4xf32>, vector<8x4xf32>, vector<8x4xf32>, vector<8x4xf32>, vector<8x4xf32>, vector<8x4xf32>, vector<8x4xf32> -> vector<8x32xf32>
    %93 = vector.shape_cast %91 : vector<64x32xf32> to vector<8x8x32xf32>
    %94 = vector.shape_cast %92 : vector<8x32xf32> to vector<1x8x32xf32>
    %95 = vector.broadcast %94 : vector<1x8x32xf32> to vector<8x8x32xf32>
    %96 = arith.mulf %93, %95 : vector<8x8x32xf32>
    %cst_40 = arith.constant dense<0.000000e+00> : vector<8x32xf32>
    %97 = vector.multi_reduction <add>, %96, %cst_40 [1] : vector<8x8x32xf32> to vector<8x32xf32>
    %c0_41 = arith.constant 0 : index
    %c0_42 = arith.constant 0 : index
    %98 = vector.load %arg12[%c0_41, %c0_42] : memref<8x8xf32, #tpu.memory_space<vmem>>, vector<8x8xf32>
    %c0_43 = arith.constant 0 : index
    %c0_44 = arith.constant 0 : index
    %99 = vector.load %arg10[%c0_43, %c0_44] : memref<32x8xf32, #tpu.memory_space<vmem>>, vector<32x8xf32>
    %cst_45 = arith.constant dense<0.000000e+00> : vector<8x8xf32>
    %100 = tpu.matmul %97, %99, %cst_45 {dimension_numbers = #tpu.dot_dimension_numbers<[1], [0], [0], [1], [0, 0, 1, 1], [], []>} : vector<8x32xf32>, vector<32x8xf32>, vector<8x8xf32> -> vector<8x8xf32>
    %101 = arith.addf %98, %100 : vector<8x8xf32>
    %c0_46 = arith.constant 0 : index
    %c0_47 = arith.constant 0 : index
    %102 = vector.load %arg12[%c0_46, %c0_47] : memref<8x8xf32, #tpu.memory_space<vmem>>, vector<8x8xf32>
    tpu.vector_store %arg12[%c0_46, %c0_47], %101 {strides = array<i32>} : memref<8x8xf32, #tpu.memory_space<vmem>>, vector<8x8xf32>,
    %c1_i32 = arith.constant 1 : i32
    %103 = arith.cmpi eq, %arg2, %c1_i32 : i32
    %104 = arith.extui %103 : i1 to i32
    %c0_i32_48 = arith.constant 0 : i32
    %105 = arith.cmpi ne, %104, %c0_i32_48 : i32
    scf.if %105 {
      %c0_49 = arith.constant 0 : index
      %c0_50 = arith.constant 0 : index
      %106 = vector.load %arg12[%c0_49, %c0_50] : memref<8x8xf32, #tpu.memory_space<vmem>>, vector<8x8xf32>
      %cst_51 = arith.constant 5.000000e-01 : f32
      %107 = vector.broadcast %cst_51 : f32 to vector<8x8xf32>
      %108 = arith.mulf %107, %106 : vector<8x8xf32>
      %109 = math.tanh %108 : vector<8x8xf32>
      %cst_52 = arith.constant 1.000000e+00 : f32
      %110 = vector.broadcast %cst_52 : f32 to vector<8x8xf32>
      %111 = arith.addf %109, %110 : vector<8x8xf32>
      %cst_53 = arith.constant 5.000000e-01 : f32
      %112 = vector.broadcast %cst_53 : f32 to vector<8x8xf32>
      %113 = arith.mulf %112, %111 : vector<8x8xf32>
      %114 = arith.mulf %106, %113 : vector<8x8xf32>
      %c0_54 = arith.constant 0 : index
      %c0_55 = arith.constant 0 : index
      %c0_56 = arith.constant 0 : index
      %115 = vector.load %arg11[%c0_54, %c0_55, %c0_56] : memref<1x8x8xf32, #tpu.memory_space<vmem>>, vector<1x8x8xf32>
      %116 = vector.shape_cast %115 : vector<1x8x8xf32> to vector<8x8xf32>
      %117 = vector.shape_cast %114 : vector<8x8xf32> to vector<1x8x8xf32>
      tpu.vector_store %arg11[%c0_54, %c0_55, %c0_56], %117 {strides = array<i32>} : memref<1x8x8xf32, #tpu.memory_space<vmem>>, vector<1x8x8xf32>,
    } else {
    }
    return
  }
  func.func @transform_0(%arg0: i32, %arg1: i32, %arg2: i32) -> (i32, i32, i32) {
    %c0_i32 = arith.constant 0 : i32
    %c0_i32_0 = arith.constant 0 : i32
    return %arg0, %arg1, %c0_i32 : i32, i32, i32
  }
  func.func @transform_1(%arg0: i32, %arg1: i32, %arg2: i32) -> (i32, i32, i32) {
    %c0_i32 = arith.constant 0 : i32
    %c0_i32_0 = arith.constant 0 : i32
    return %arg0, %arg2, %c0_i32 : i32, i32, i32
  }
  func.func @transform_2(%arg0: i32, %arg1: i32, %arg2: i32) -> (i32, i32, i32) {
    %c0_i32 = arith.constant 0 : i32
    %c0_i32_0 = arith.constant 0 : i32
    return %arg0, %arg2, %c0_i32 : i32, i32, i32
  }
  func.func @transform_3(%arg0: i32, %arg1: i32, %arg2: i32) -> (i32, i32) {
    %c0_i32 = arith.constant 0 : i32
    %c0_i32_0 = arith.constant 0 : i32
    %c0_i32_1 = arith.constant 0 : i32
    return %c0_i32, %c0_i32_0 : i32, i32
  }
  func.func @transform_4(%arg0: i32, %arg1: i32, %arg2: i32) -> (i32, i32) {
    %c0_i32 = arith.constant 0 : i32
    %c0_i32_0 = arith.constant 0 : i32
    %c0_i32_1 = arith.constant 0 : i32
    return %c0_i32, %c0_i32_0 : i32, i32
  }
  func.func @transform_5(%arg0: i32, %arg1: i32, %arg2: i32) -> (i32, i32) {
    %c0_i32 = arith.constant 0 : i32
    %c0_i32_0 = arith.constant 0 : i32
    %c0_i32_1 = arith.constant 0 : i32
    return %c0_i32, %c0_i32_0 : i32, i32
  }
  func.func @transform_6(%arg0: i32, %arg1: i32, %arg2: i32) -> (i32, i32) {
    %c0_i32 = arith.constant 0 : i32
    %c0_i32_0 = arith.constant 0 : i32
    %c0_i32_1 = arith.constant 0 : i32
    return %c0_i32, %c0_i32_0 : i32, i32
  }
  func.func @transform_7(%arg0: i32, %arg1: i32, %arg2: i32) -> (i32, i32) {
    %c0_i32 = arith.constant 0 : i32
    %c0_i32_0 = arith.constant 0 : i32
    %c0_i32_1 = arith.constant 0 : i32
    return %c0_i32, %c0_i32_0 : i32, i32
  }
  func.func @transform_8(%arg0: i32, %arg1: i32, %arg2: i32) -> (i32, i32, i32) {
    %c0_i32 = arith.constant 0 : i32
    %c0_i32_0 = arith.constant 0 : i32
    return %arg0, %arg1, %c0_i32 : i32, i32, i32
  }
}

</mosaic_0001>

<bundles_post_ra>
// kernel: tpu_custom_call.1
= control target key start
LH: loop header
LB: loop body
LE: loop exit
PB: predicated region body
PF: predicated region fallthrough
CT: control target
= control target key end

     0   :  { %s2393_s0 = inlined_call_operand.vmem [shape: f32[2,16,3], index: 0, kind: input, shape index: {}]   ;;  %s2394_s1 = inlined_call_operand.vmem [shape: f32[2,16,3], index: 1, kind: input, shape index: {}]   ;;  %s2395_s2 = inlined_call_operand.vmem [shape: f32[2,16,4], index: 2, kind: input, shape index: {}]   ;;  %s2396_s3 = inlined_call_operand.vmem [shape: f32[3,128], index: 3, kind: input, shape index: {}]   ;;  %s2397_s4 = inlined_call_operand.vmem [shape: bf16[128,128], index: 4, kind: input, shape index: {}]   ;;  %s2398_s5 = inlined_call_operand.hbm [shape: bf16[128,128], index: 5, kind: input, shape index: {}]   ;;  %s2399_s6 = inlined_call_operand.vmem [shape: bf16[128,32], index: 6, kind: input, shape index: {}]   ;;  %s2400_s7 = inlined_call_operand.vmem [shape: f32[32,8], index: 7, kind: input, shape index: {}]   ;;  %s2401_s8 = inlined_call_operand.vmem [shape: f32[2,16,8], index: 8, kind: output, shape index: {}]  }
   0x1   :  { %2402 = sst [smem:[#allocation9_spill]] %s2398_s5 }
   0x2   :  { %13 = vsyncpa [#allocation4], 0  ;;  %s1994_s27 = smov 0   ;;  %s1996_s28 = smov 0  }
   0x3   :  { %s1998_s29 = smov 0   ;;  %s2000_s30 = smov 0  }
   0x4   :  { %s2002_s9 = smov 0   ;;  %s2004_s10 = smov 0  }
   0x5   :  { %s2006_s11 = smov 0  }
   0x6 LB: > { %s1490_s12 = sadd.s32 4294967295, %s1936_s11   ;;  %s31_s13 = sadd.s32 1, %s1924_s30  ;;  %s1936_s11 = sphi %s2006_s11, %s19_s11   ;;  %s1932_s10 = sphi %s2004_s10, %s2417_s10   ;;  %s1928_s9 = sphi %s2002_s9, %s2416_s9   ;;  %s1924_s30 = sphi %s2000_s30, %s2415_s30   ;;  %s1920_s29 = sphi %s1998_s29, %s2414_s29   ;;  %s1916_s28 = sphi %s1996_s28, %s2413_s28   ;;  %s1912_s27 = sphi %s1994_s27, %s2412_s27  }
   0x7   : > { %p32_p0 = scmp.ge.s32.totalorder %s31_s13, 2  ;;  %s34_s14 = sadd.s32 1, %s1928_s9 }
   0x8   : > { %s38_s15 = sadd.s32 1, %s1932_s10  ;;  %p1492_p1 = scmp.ge.s32.totalorder %s1936_s11, 1 }
   0x9   : > { %s2419_s13 = smov (%p32_p0, %s31_s13), 0  ;;  %s2421_s14 = smov (!%p32_p0, %s34_s14), %s1928_s9 }
   0xa   : > { %2403 = sst [smem:[#allocation6_spill]] %s2419_s13  ;;  %p260_p2 = scmp.lt.s32.totalorder %s1936_s11, 9 }
   0xb   : > { %p36_p3 = scmp.ge.s32.totalorder %s2421_s14, 2  ;;  %p2038_p4 = scmp.eq.s32.totalorder %s1490_s12, 0 }
   0xc   : > { %p2042_p5 = pnand %p1492_p1, %p260_p2  ;;  %s2406_s5 = sld [smem:[#allocation9_spill]] }
   0xd   : > { %s2423_s14 = smov (%p36_p3, %s2421_s14), 0  ;;  %s2425_s15 = smov (!%p36_p3, %s38_s15), %s1932_s10 }
   0xe   : > { %2407 = sst [smem:[#allocation7_spill]] %s2423_s14  ;;  %p1658_p6 = pneg %p2042_p5 }
   0xf   : > { %p40_p7 = scmp.ge.s32.totalorder %s2425_s15, 2  ;;  %s1938_s21 = smov [#allocation3]  }
  0x10   : > { %s279_s22 = sshll.u32 %s1938_s21, 4  ;;  %p1659_p8 = pnand %p2038_p4, %p1658_p6  ;;  %s280_s22 = int_to_ptr.vmem [resolvable:$true] %s279_s22 }
  0x11   : > { %s2427_s15 = smov (%p40_p7, %s2425_s15), 0  ;;  %s1939_s23 = smov 64  }
  0x12   : > { %s277_s20 = sshll.u32 %s2406_s5, 4  ;;  %2408 = sst [smem:[#allocation8_spill]] %s2427_s15  ;;  %s278_s20 = int_to_ptr.hbm [resolvable:$true] %s277_s20 }
  0x13   : > { %s1940_s24 = smov 4   ;;  %334 = sbr.rel (%p2042_p5) target bundleno = 899 (0x383), region = 52 }
  0x14   : > { %1661 = dma.hbm_to_vmem [thread:$0]  (!%p1659_p8), %s278_s20, 1024, %s280_s22, [#allocation4], %s1939_s23, %s1939_s23, %s1940_s24  }
  0x18   : > { %1907 = dma.done.wait (%p2038_p4), [#allocation4], 1024  }
  0x19   : > { %1909 = vsyncadd (%p2038_p4), [#allocation4], 4294966272  ;;  %p391_p9 = scmp.lt.s32.totalorder %s1920_s29, 1  ;;  %p393_p10 = scmp.lt.s32.totalorder %s1916_s28, 1 }
  0x1a   : > { %p401_p11 = scmp.lt.s32.totalorder %s1912_s27, 1  ;;  %p1505_p12 = scmp.ne.s32.totalorder %s1912_s27, 0 }
  0x1b   : > { %s2429_s29 = smov (!%p391_p9, %s1920_s29), 1  ;;  %s2431_s28 = smov (!%p393_p10, %s1916_s28), 1 }
  0x1c   : > { %s1497_s25 = sshll.u32 %s2429_s29, 1 }
  0x1d   : > { %s396_s26 = sadd.s32 %s1497_s25, %s2431_s28 }
  0x1e   : > { %s1498_s12 = sshll.u32 %s396_s26, 3 }
  0x1f   : > { %s398_s19 = scalar_lea.vmem %s2393_s0, %s1498_s12  ;;  %s2075_s21 = scalar_lea.vmem %s2401_s8, %s1498_s12 }
  0x20   : > { %s402_s22 = scalar_select %p401_p11, %s1912_s27, 1 }
  0x21   : > { %426 = sbr.rel (%p1505_p12) target bundleno = 40 (0x28), region = 60 }
  0x22   : > { %s404_s23 = sadd.s32 %s1497_s25, %s402_s22 }
  0x23   : > { %s1500_s24 = sshll.u32 %s404_s23, 3 }
  0x24   : > { %s406_s14 = scalar_lea.vmem %s2394_s1, %s1500_s24  ;;  %s2084_s28 = scalar_lea.vmem %s2395_s2, %s1500_s24 }
  0x26   : > { %vm427_vm0 = vcmask 64512   ;;  %v1941_v0 = vmov 0.0  }
  0x27   : > { %428 = vst.msk [vmem:[#allocation2] sm:$0xff] %vm427_vm0, %v1941_v0 }
  0x28 PF: > { %v429_v1 = vld [vmem:[%s398_s19] sm:$0xff]  ;;  %vm472_vm1 = vcmask 23552   ;;  %v1629_v45 = vld [vmem:[%s2397_s4 + $0x38] sm:$0xff]  ;;  %v1628_v49 = vld [vmem:[%s2397_s4 + $0x30] sm:$0xff]  ;;  %s1942_s12 = smov 8   ;;  %s1943_s17 = smov 12  }
  0x29   : > { %v430_v2 = vld [vmem:[%s406_s14] sm:$0xff]  ;;  %v440_v3 = vperm.slane %v429_v1, 0  ;;  %v436_v4 = vrot.slane %v429_v1, 4  ;;  %v434_v5 = vrot.slane %v429_v1, 2  ;;  %v433_v6 = vrot.slane %v429_v1, 1  ;;  %883 = vmatpush.bf16.msra.mxu0 %v1629_v45  ;;  %1646 = vmatpush.bf16.msra.mxu3 %v1629_v45  ;;  %v1627_v59 = vld [vmem:[%s2397_s4 + $0x28] sm:$0xff] }
  0x2a   : > { %v437_v7 = vrot.slane %v429_v1, 5  ;;  %v435_v8 = vrot.slane %v429_v1, 3  ;;  %v438_v15 = vrot.slane %v429_v1, 6  ;;  %v439_v21 = vrot.slane %v429_v1, 7  ;;  %s1944_s18 = smov 4   ;;  %s1945_s19 = smov 20  }
  0x2b   : > { %v456_v9 = vsub.f32 %v430_v2, %v440_v3  ;;  %v444_v10 = vperm.slane %v436_v4, 0  ;;  %v442_v11 = vperm.slane %v434_v5, 0  ;;  %v441_v12 = vperm.slane %v433_v6, 0  ;;  %s1946_s16 = smov 28   ;;  %s1948_s20 = smov 24  }
  0x2c   : > { %v445_v13 = vperm.slane %v437_v7, 0  ;;  %v443_v14 = vperm.slane %v435_v8, 0  ;;  %v446_v29 = vperm.slane %v438_v15, 0  ;;  %v447_v32 = vperm.slane %v439_v21, 0  ;;  %v1626_v7 = vld [vmem:[%s2397_s4 + $0x20] sm:$0xff]  ;;  %p1619_p13 = scmp.ne.s32.totalorder %s1912_s27, 1 }
  0x2d   : > { %v464_v16 = vmul.f32 %v456_v9, %v456_v9  ;;  %v460_v17 = vsub.f32 %v430_v2, %v444_v10  ;;  %v458_v18 = vsub.f32 %v430_v2, %v442_v11  ;;  %v457_v19 = vsub.f32 %v430_v2, %v441_v12  ;;  %884 = vmatpush.bf16.msra.mxu0 %v1628_v49 }
  0x2e   : > { %v461_v20 = vsub.f32 %v430_v2, %v445_v13  ;;  %v459_v25 = vsub.f32 %v430_v2, %v443_v14  ;;  %v462_v34 = vsub.f32 %v430_v2, %v446_v29  ;;  %v463_v37 = vsub.f32 %v430_v2, %v447_v32  ;;  %1647 = vmatpush.bf16.msra.mxu3 %v1628_v49 }
  0x2f   : > { %v473_v22 = vsel %vm472_vm1, %v464_v16, 0.0  ;;  %v468_v23 = vmul.f32 %v460_v17, %v460_v17  ;;  %v466_v24 = vmul.f32 %v458_v18, %v458_v18  ;;  %v465_v28 = vmul.f32 %v457_v19, %v457_v19 }
  0x30   : > { %474 = vadd.xlane.f32.xlu0 %v473_v22  ;;  %v469_v30 = vmul.f32 %v461_v20, %v461_v20  ;;  %v467_v31 = vmul.f32 %v459_v25, %v459_v25  ;;  %v470_v38 = vmul.f32 %v462_v34, %v462_v34  ;;  %v471_v39 = vmul.f32 %v463_v37, %v463_v37  ;;  %v1625_v25 = vld [vmem:[%s2397_s4 + $0x18] sm:$0xff] }
  0x31   : > { %v485_v26 = vsel %vm472_vm1, %v468_v23, 0.0  ;;  %v479_v27 = vsel %vm472_vm1, %v466_v24, 0.0  ;;  %v476_v33 = vsel %vm472_vm1, %v465_v28, 0.0  ;;  %885 = vmatpush.bf16.msra.mxu0 %v1627_v59 }
  0x32   : > { %486 = vadd.xlane.f32.xlu2 %v485_v26  ;;  %480 = vadd.xlane.f32.xlu1 %v479_v27  ;;  %v488_v35 = vsel %vm472_vm1, %v469_v30, 0.0  ;;  %v482_v36 = vsel %vm472_vm1, %v467_v31, 0.0  ;;  %v491_v40 = vsel %vm472_vm1, %v470_v38, 0.0  ;;  %v494_v41 = vsel %vm472_vm1, %v471_v39, 0.0 }
  0x33   : > { %1648 = vmatpush.bf16.msra.mxu3 %v1627_v59 }
  0x35   : > { %886 = vmatpush.bf16.msra.mxu0 %v1626_v7 }
  0x37   : > { %1649 = vmatpush.bf16.msra.mxu3 %v1626_v7 }
  0x38   : > { %477 = vadd.xlane.f32.xlu0 %v476_v33 }
  0x39   : > { %887 = vmatpush.bf16.msra.mxu0 %v1625_v25 }
  0x3a   : > { %489 = vadd.xlane.f32.xlu2 %v488_v35  ;;  %483 = vadd.xlane.f32.xlu1 %v482_v36 }
  0x3b   : > { %1650 = vmatpush.bf16.msra.mxu3 %v1625_v25 }
  0x40   : > { %492 = vadd.xlane.f32.xlu0 %v491_v40 }
  0x42   : > { %495 = vadd.xlane.f32.xlu1 %v494_v41 }
  0xa3   : > { %v2095_v42 = vpop.xlane.xlu0 %474 }
  0xa4   : > { %1734 = vrsqrt.f32 %v2095_v42  ;;  %vm504_vm2 = vcmp.eq.f32.partialorder %v2095_v42, inf  ;;  %vm506_vm3 = vcmp.eq.f32.partialorder %v2095_v42, 0.0  ;;  %v507_v62 = vand.u32 2147483648, %v2095_v42 }
  0xa5   : > { %v2098_v43 = vpop.xlane.xlu2 %486  ;;  %v2100_v44 = vpop.xlane.xlu1 %480 }
  0xa6   : > { %1736 = vrsqrt.f32 %v2098_v43  ;;  %vm552_vm4 = vcmp.eq.f32.partialorder %v2098_v43, inf  ;;  %vm554_vm5 = vcmp.eq.f32.partialorder %v2098_v43, 0.0  ;;  %v555_v1 = vand.u32 2147483648, %v2098_v43 }
  0xa7   : > { %1738 = vrsqrt.f32 %v2100_v44  ;;  %vm528_vm6 = vcmp.eq.f32.partialorder %v2100_v44, inf  ;;  %vm530_vm7 = vcmp.eq.f32.partialorder %v2100_v44, 0.0  ;;  %v531_v10 = vand.u32 2147483648, %v2100_v44 }
  0xaa   : > { %v1735_v46 = vpop.eup %1734 }
  0xab   : > { %v498_v47 = vmul.f32 %v1735_v46, %v2095_v42  ;;  %v2108_v48 = vpop.xlane.xlu0 %477 }
  0xac   : > { %v1737_v50 = vpop.eup %1736  ;;  %1740 = vrsqrt.f32 %v2108_v48  ;;  %v519_v11 = vand.u32 2147483648, %v2108_v48  ;;  %vm516_vm8 = vcmp.eq.f32.partialorder %v2108_v48, inf  ;;  %vm518_vm10 = vcmp.eq.f32.partialorder %v2108_v48, 0.0 }
  0xad   : > { %v1739_v51 = vpop.eup %1738  ;;  %v499_v52 = vmul.f32 %v1735_v46, %v498_v47  ;;  %v546_v53 = vmul.f32 %v1737_v50, %v2098_v43  ;;  %v2115_v54 = vpop.xlane.xlu2 %489 }
  0xae   : > { %v2117_v55 = vpop.xlane.xlu1 %483  ;;  %v522_v56 = vmul.f32 %v1739_v51, %v2100_v44  ;;  %1742 = vrsqrt.f32 %v2115_v54  ;;  %vm564_vm9 = vcmp.eq.f32.partialorder %v2115_v54, inf  ;;  %v567_v19 = vand.u32 2147483648, %v2115_v54 }
  0xaf   : > { %v500_v57 = vmul.f32 0.5, %v499_v52  ;;  %v547_v58 = vmul.f32 %v1737_v50, %v546_v53  ;;  %1744 = vrsqrt.f32 %v2117_v55  ;;  %vm566_vm11 = vcmp.eq.f32.partialorder %v2115_v54, 0.0 }
  0xb0   : > { %v523_v60 = vmul.f32 %v1739_v51, %v522_v56  ;;  %v543_v28 = vand.u32 2147483648, %v2117_v55  ;;  %vm540_vm12 = vcmp.eq.f32.partialorder %v2117_v55, inf  ;;  %vm542_vm13 = vcmp.eq.f32.partialorder %v2117_v55, 0.0 }
  0xb1   : > { %v501_v61 = vsub.f32 1.5, %v500_v57  ;;  %v548_v63 = vmul.f32 0.5, %v547_v58 }
  0xb2   : > { %v1741_v0 = vpop.eup %1740  ;;  %v524_v2 = vmul.f32 0.5, %v523_v60 }
  0xb3   : > { %v502_v3 = vmul.f32 %v1735_v46, %v501_v61  ;;  %v549_v4 = vsub.f32 1.5, %v548_v63  ;;  %v510_v5 = vmul.f32 %v1741_v0, %v2108_v48  ;;  %v2134_v6 = vpop.xlane.xlu0 %492 }
  0xb4   : > { %v1743_v8 = vpop.eup %1742  ;;  %v525_v9 = vsub.f32 1.5, %v524_v2  ;;  %1746 = vrsqrt.f32 %v2134_v6  ;;  %v579_v29 = vand.u32 2147483648, %v2134_v6  ;;  %vm576_vm14 = vcmp.eq.f32.partialorder %v2134_v6, inf }
  0xb5   : > { %v1745_v12 = vpop.eup %1744  ;;  %v503_v13 = vmul.f32 %v502_v3, %v2095_v42  ;;  %v550_v14 = vmul.f32 %v1737_v50, %v549_v4  ;;  %v511_v15 = vmul.f32 %v1741_v0, %v510_v5  ;;  %v558_v16 = vmul.f32 %v1743_v8, %v2115_v54 }
  0xb6   : > { %v2144_v17 = vpop.xlane.xlu1 %495  ;;  %v526_v18 = vmul.f32 %v1739_v51, %v525_v9  ;;  %v534_v20 = vmul.f32 %v1745_v12, %v2117_v55  ;;  %vm578_vm15 = vcmp.eq.f32.partialorder %v2134_v6, 0.0 }
  0xb7   : > { %1748 = vrsqrt.f32 %v2144_v17  ;;  %v505_v21 = vsel %vm504_vm2, %v2095_v42, %v503_v13  ;;  %v551_v22 = vmul.f32 %v550_v14, %v2098_v43  ;;  %v512_v23 = vmul.f32 0.5, %v511_v15 }
  0xb8   : > { %v559_v24 = vmul.f32 %v1743_v8, %v558_v16  ;;  %v527_v26 = vmul.f32 %v526_v18, %v2100_v44  ;;  %v535_v27 = vmul.f32 %v1745_v12, %v534_v20  ;;  %v508_v30 = vsel %vm506_vm3, %v507_v62, %v505_v21  ;;  %v1622_v16 = vld [vmem:[%s2397_s4] sm:$0xff] }
  0xb9   : > { %v553_v31 = vsel %vm552_vm4, %v2098_v43, %v551_v22  ;;  %v513_v32 = vsub.f32 1.5, %v512_v23  ;;  %v591_v38 = vand.u32 2147483648, %v2144_v17  ;;  %v1624_v43 = vld [vmem:[%s2397_s4 + $0x10] sm:$0xff]  ;;  %v593_v47 = vmul.f32 2.0, %v508_v30 }
  0xba   : > { %v560_v33 = vmul.f32 0.5, %v559_v24  ;;  %v1747_v34 = vpop.eup %1746  ;;  %v2171_v35 = vsel %vm554_vm5, %v555_v1, %v553_v31  ;;  %v529_v36 = vsel %vm528_vm6, %v2100_v44, %v527_v26  ;;  %v536_v37 = vmul.f32 0.5, %v535_v27  ;;  %888 = vmatpush.bf16.msra.mxu0 %v1624_v43  ;;  %1651 = vmatpush.bf16.msra.mxu3 %v1624_v43 }
  0xbb   : > { %v2180_v39 = vsel %vm530_vm7, %v531_v10, %v529_v36  ;;  %v514_v40 = vmul.f32 %v1741_v0, %v513_v32  ;;  %v570_v42 = vmul.f32 %v1747_v34, %v2134_v6  ;;  %v1506_v49 = vadd.f32 -0.5, %v508_v30  ;;  %v1623_v0 = vld [vmem:[%s2397_s4 + $0x8] sm:$0xff]  ;;  %v2230_v32 = vld [vmem:[%s2396_s3] ss:$0 sm:$0xff] }
  0xbc   : > { %v561_v41 = vsub.f32 1.5, %v560_v33  ;;  %v537_v46 = vsub.f32 1.5, %v536_v37  ;;  %v1514_v50 = vadd.f32 -1.0, %v508_v30  ;;  %vm588_vm0 = vcmp.eq.f32.partialorder %v2144_v17, inf }
  0xbd   : > { %v1749_v45 = vpop.eup %1748  ;;  %v515_v44 = vmul.f32 %v514_v40, %v2108_v48  ;;  %v571_v52 = vmul.f32 %v1747_v34, %v570_v42  ;;  %v601_v57 = vmul.f32 %v593_v47, %v593_v47  ;;  %v651_v58 = vmul.f32 2.0, %v1506_v49  ;;  %v2251_v49 = vld [vmem:[%s2396_s3 + $0x1] ss:$0 sm:$0xff] }
  0xbe   : > { %v562_v51 = vmul.f32 %v1743_v8, %v561_v41  ;;  %v582_v53 = vmul.f32 %v1749_v45, %v2144_v17  ;;  %v538_v56 = vmul.f32 %v1745_v12, %v537_v46  ;;  %v717_v59 = vmul.f32 2.0, %v1514_v50  ;;  %889 = vmatpush.bf16.msra.mxu0 %v1623_v0  ;;  %1652 = vmatpush.bf16.msra.mxu3 %v1623_v0 }
  0xbf   : > { %v517_v60 = vsel %vm516_vm8, %v2108_v48, %v515_v44  ;;  %v572_v62 = vmul.f32 0.5, %v571_v52  ;;  %vm590_vm1 = vcmp.eq.f32.partialorder %v2144_v17, 0.0  ;;  %v609_v3 = vsub.f32 0.0, %v601_v57 }
  0xc0   : > { %v563_v61 = vmul.f32 %v562_v51, %v2115_v54  ;;  %v583_v63 = vmul.f32 %v1749_v45, %v582_v53  ;;  %v520_v1 = vsel %vm518_vm10, %v519_v11, %v517_v60  ;;  %v539_v2 = vmul.f32 %v538_v56, %v2117_v55 }
  0xc1   : > { %v659_v4 = vmul.f32 %v651_v58, %v651_v58  ;;  %v573_v7 = vsub.f32 1.5, %v572_v62  ;;  %v594_v9 = vmul.f32 2.0, %v520_v1  ;;  %v617_v11 = vmul.f32 1.442695, %v609_v3 }
  0xc2   : > { %v565_v5 = vsel %vm564_vm9, %v2115_v54, %v563_v61  ;;  %v584_v8 = vmul.f32 0.5, %v583_v63  ;;  %v541_v48 = vsel %vm540_vm12, %v2117_v55, %v539_v2  ;;  %v1507_v12 = vadd.f32 -0.5, %v520_v1  ;;  %890 = vmatpush.bf16.msra.mxu0 %v1622_v16  ;;  %1653 = vmatpush.bf16.msra.mxu3 %v1622_v16 }
  0xc3   : > { %v2211_v10 = vsel %vm566_vm11, %v567_v19, %v565_v5  ;;  %v544_v13 = vsel %vm542_vm13, %v543_v28, %v541_v48  ;;  %v574_v14 = vmul.f32 %v1747_v34, %v573_v7  ;;  %v602_v54 = vmul.f32 %v594_v9, %v594_v9 }
  0xc4   : > { %v585_v15 = vsub.f32 1.5, %v584_v8  ;;  %1750 = vpow2.f32 %v617_v11  ;;  %v652_v18 = vmul.f32 2.0, %v1507_v12  ;;  %v667_v19 = vsub.f32 0.0, %v659_v4 }
  0xc5   : > { %v1515_v20 = vadd.f32 -1.0, %v520_v1  ;;  %v575_v21 = vmul.f32 %v574_v14, %v2134_v6  ;;  %v610_v23 = vsub.f32 0.0, %v602_v54  ;;  %v725_v24 = vmul.f32 %v717_v59, %v717_v59  ;;  %v2258_v59 = vld [vmem:[%s2396_s3 + $0x2] ss:$0 sm:$0xff] }
  0xc6   : > { %v586_v22 = vmul.f32 %v1749_v45, %v585_v15  ;;  %v660_v55 = vmul.f32 %v652_v18, %v652_v18  ;;  %v675_v25 = vmul.f32 1.442695, %v667_v19  ;;  %v595_v27 = vmul.f32 2.0, %v2180_v39 }
  0xc7   : > { %v718_v26 = vmul.f32 2.0, %v1515_v20  ;;  %v577_v28 = vsel %vm576_vm14, %v2134_v6, %v575_v21  ;;  %v619_v31 = vmul.f32 1.442695, %v610_v23  ;;  %v733_v33 = vsub.f32 0.0, %v725_v24 }
  0xc8   : > { %v587_v30 = vmul.f32 %v586_v22, %v2144_v17  ;;  %v2236_v34 = vsel %vm578_vm15, %v579_v29, %v577_v28  ;;  %v668_v36 = vsub.f32 0.0, %v660_v55  ;;  %1752 = vpow2.f32 %v675_v25 }
  0xc9   : > { %v726_v37 = vmul.f32 %v718_v26, %v718_v26  ;;  %1754 = vpow2.f32 %v619_v31  ;;  %v741_v41 = vmul.f32 1.442695, %v733_v33  ;;  %v596_v42 = vmul.f32 2.0, %v544_v13 }
  0xca   : > { %v589_v40 = vsel %vm588_vm0, %v2144_v17, %v587_v30  ;;  %v1751_v43 = vpop.eup %1750  ;;  %v677_v6 = vmul.f32 1.442695, %v668_v36  ;;  %v603_v46 = vmul.f32 %v595_v27, %v595_v27  ;;  %v1508_v44 = vadd.f32 -0.5, %v2180_v39 }
  0xcb   : > { %v2245_v45 = vsel %vm590_vm1, %v591_v38, %v589_v40  ;;  %v734_v29 = vsub.f32 0.0, %v726_v37  ;;  %v635_v47 = vmul.f32 %v1751_v43, %v2230_v32  ;;  %1756 = vpow2.f32 %v741_v41 }
  0xcc   : > { %v604_v50 = vmul.f32 %v596_v42, %v596_v42  ;;  %1758 = vpow2.f32 %v677_v6  ;;  %v611_v52 = vsub.f32 0.0, %v603_v46  ;;  %v1509_v17 = vadd.f32 -0.5, %v544_v13 }
  0xcd   : > { %v743_v51 = vmul.f32 1.442695, %v734_v29  ;;  %v653_v53 = vmul.f32 2.0, %v1508_v44  ;;  %v1516_v56 = vadd.f32 -1.0, %v2180_v39  ;;  %v1517_v57 = vadd.f32 -1.0, %v544_v13 }
  0xce   : > { %v612_v38 = vsub.f32 0.0, %v604_v50  ;;  %v1753_v58 = vpop.eup %1752  ;;  %v621_v60 = vmul.f32 1.442695, %v611_v52  ;;  %v654_v61 = vmul.f32 2.0, %v1509_v17  ;;  %v597_v62 = vmul.f32 2.0, %v2171_v35 }
  0xcf   : > { %1760 = vpow2.f32 %v743_v51  ;;  %v1755_v63 = vpop.eup %1754  ;;  %v693_v0 = vmul.f32 %v1753_v58, %v2251_v49  ;;  %v661_v2 = vmul.f32 %v653_v53, %v653_v53  ;;  %v719_v3 = vmul.f32 2.0, %v1516_v56 }
  0xd0   : > { %v623_v1 = vmul.f32 1.442695, %v612_v38  ;;  %v636_v39 = vmul.f32 %v1755_v63, %v2230_v32  ;;  %1762 = vpow2.f32 %v621_v60  ;;  %v662_v4 = vmul.f32 %v654_v61, %v654_v61 }
  0xd1   : > { %v720_v5 = vmul.f32 2.0, %v1517_v57  ;;  %v1757_v7 = vpop.eup %1756  ;;  %v701_v8 = vadd.f32 %v693_v0, %v635_v47  ;;  %v669_v9 = vsub.f32 0.0, %v661_v2  ;;  %v727_v48 = vmul.f32 %v719_v3, %v719_v3 }
  0xd2   : > { %1764 = vpow2.f32 %v623_v1  ;;  %v1759_v11 = vpop.eup %1758  ;;  %v759_v12 = vmul.f32 %v1757_v7, %v2258_v59  ;;  %v670_v13 = vsub.f32 0.0, %v662_v4  ;;  %v598_v15 = vmul.f32 2.0, %v2211_v10 }
  0xd3   : > { %v728_v14 = vmul.f32 %v720_v5, %v720_v5  ;;  %v694_v16 = vmul.f32 %v1759_v11, %v2251_v49  ;;  %v679_v54 = vmul.f32 1.442695, %v669_v9  ;;  %v735_v18 = vsub.f32 0.0, %v727_v48 }
  0xd4   : > { %v605_v19 = vmul.f32 %v597_v62, %v597_v62  ;;  %v2266_v21 = vadd.f32 %v759_v12, %v701_v8  ;;  %v681_v22 = vmul.f32 1.442695, %v670_v13  ;;  %v606_v24 = vmul.f32 %v598_v15, %v598_v15 }
  0xd5   : > { %v1761_v20 = vpop.eup %1760  ;;  %v736_v23 = vsub.f32 0.0, %v728_v14  ;;  %v702_v55 = vadd.f32 %v694_v16, %v636_v39  ;;  %1766 = vpow2.f32 %v679_v54  ;;  %v745_v26 = vmul.f32 1.442695, %v735_v18 }
  0xd6   : > { %v760_v25 = vmul.f32 %v1761_v20, %v2258_v59  ;;  %v1763_v27 = vpop.eup %1762  ;;  %v775_v28 = vmul.f32 0.5, %v2266_v21  ;;  %1768 = vpow2.f32 %v681_v22  ;;  %v613_v31 = vsub.f32 0.0, %v605_v19 }
  0xd7   : > { %v747_v30 = vmul.f32 1.442695, %v736_v23  ;;  %v637_v37 = vmul.f32 %v1763_v27, %v2230_v32  ;;  %1770 = vpow2.f32 %v745_v26  ;;  %v614_v40 = vsub.f32 0.0, %v606_v24 }
  0xd8   : > { %v1765_v33 = vpop.eup %1764  ;;  %v2270_v36 = vadd.f32 %v760_v25, %v702_v55  ;;  %1772 = vtanh.f32 %v775_v28  ;;  %v625_v42 = vmul.f32 1.442695, %v613_v31  ;;  %v1510_v43 = vadd.f32 -0.5, %v2171_v35 }
  0xd9   : > { %v638_v41 = vmul.f32 %v1765_v33, %v2230_v32  ;;  %1774 = vpow2.f32 %v747_v30  ;;  %v627_v29 = vmul.f32 1.442695, %v614_v40  ;;  %v1511_v46 = vadd.f32 -0.5, %v2211_v10 }
  0xda   : > { %v776_v6 = vmul.f32 0.5, %v2270_v36  ;;  %1776 = vpow2.f32 %v625_v42  ;;  %v655_v47 = vmul.f32 2.0, %v1510_v43  ;;  %v1518_v50 = vadd.f32 -1.0, %v2171_v35 }
  0xdb   : > { %v1519_v44 = vadd.f32 -1.0, %v2211_v10  ;;  %v1767_v51 = vpop.eup %1766  ;;  %v656_v52 = vmul.f32 2.0, %v1511_v46  ;;  %v599_v17 = vmul.f32 2.0, %v2236_v34  ;;  %v600_v38 = vmul.f32 2.0, %v2245_v45 }
  0xdc   : > { %1778 = vtanh.f32 %v776_v6  ;;  %v1769_v53 = vpop.eup %1768  ;;  %v695_v56 = vmul.f32 %v1767_v51, %v2251_v49  ;;  %v663_v57 = vmul.f32 %v655_v47, %v655_v47  ;;  %v721_v58 = vmul.f32 2.0, %v1518_v50 }
  0xdd   : > { %1780 = vpow2.f32 %v627_v29  ;;  %v1771_v60 = vpop.eup %1770  ;;  %v696_v61 = vmul.f32 %v1769_v53, %v2251_v49  ;;  %v664_v62 = vmul.f32 %v656_v52, %v656_v52  ;;  %v722_v35 = vmul.f32 2.0, %v1519_v44 }
  0xde   : > { %v607_v63 = vmul.f32 %v599_v17, %v599_v17  ;;  %v1773_v10 = vpop.eup %1772  ;;  %v703_v0 = vadd.f32 %v695_v56, %v637_v37  ;;  %v761_v1 = vmul.f32 %v1771_v60, %v2258_v59  ;;  %v671_v2 = vsub.f32 0.0, %v663_v57 }
  0xdf   : > { %v729_v3 = vmul.f32 %v721_v58, %v721_v58  ;;  %v1775_v39 = vpop.eup %1774  ;;  %v791_v4 = vadd.f32 1.0, %v1773_v10  ;;  %v704_v5 = vadd.f32 %v696_v61, %v638_v41  ;;  %v672_v7 = vsub.f32 0.0, %v664_v62 }
  0xe0   : > { %v730_v8 = vmul.f32 %v722_v35, %v722_v35  ;;  %v1777_v9 = vpop.eup %1776  ;;  %v762_v48 = vmul.f32 %v1775_v39, %v2258_v59  ;;  %v2285_v11 = vadd.f32 %v761_v1, %v703_v0  ;;  %v683_v12 = vmul.f32 1.442695, %v671_v2 }
  0xe1   : > { %v737_v13 = vsub.f32 0.0, %v729_v3  ;;  %v799_v15 = vmul.f32 0.5, %v791_v4  ;;  %v639_v16 = vmul.f32 %v1777_v9, %v2230_v32  ;;  %v685_v54 = vmul.f32 1.442695, %v672_v7 }
  0xe2   : > { %v1779_v14 = vpop.eup %1778  ;;  %v738_v18 = vsub.f32 0.0, %v730_v8  ;;  %v2288_v22 = vadd.f32 %v762_v48, %v704_v5  ;;  %v777_v23 = vmul.f32 0.5, %v2285_v11  ;;  %1782 = vpow2.f32 %v683_v12 }
  0xe3   : > { %v1781_v19 = vpop.eup %1780  ;;  %v792_v20 = vadd.f32 1.0, %v1779_v14  ;;  %v807_v24 = vmul.f32 %v799_v15, %v2266_v21  ;;  %1784 = vpow2.f32 %v685_v54  ;;  %v749_v25 = vmul.f32 1.442695, %v737_v13 }
  0xe4   : > { %v640_v55 = vmul.f32 %v1781_v19, %v2230_v32  ;;  %v778_v27 = vmul.f32 0.5, %v2288_v22  ;;  %1786 = vtanh.f32 %v777_v23  ;;  %v751_v28 = vmul.f32 1.442695, %v738_v18 }
  0xe5   : > { %v800_v26 = vmul.f32 0.5, %v792_v20  ;;  %1788 = vpow2.f32 %v749_v25  ;;  %v608_v30 = vmul.f32 %v600_v38, %v600_v38  ;;  %v615_v31 = vsub.f32 0.0, %v607_v63  ;;  %v1637_v25 = vld [vmem:[#allocation3 + $0x38] sm:$0xff] }
  0xe6   : > { %v1512_v33 = vadd.f32 -0.5, %v2236_v34  ;;  %1790 = vtanh.f32 %v778_v27  ;;  %v1513_v40 = vadd.f32 -0.5, %v2245_v45  ;;  %v1520_v21 = vadd.f32 -1.0, %v2236_v34  ;;  %1020 = vmatpush.bf16.msra.mxu1 %v1637_v25 }
  0xe7   : > { %v808_v37 = vmul.f32 %v800_v26, %v2270_v36  ;;  %1792 = vpow2.f32 %v751_v28  ;;  %v616_v41 = vsub.f32 0.0, %v608_v30  ;;  %v629_v42 = vmul.f32 1.442695, %v615_v31  ;;  %v1636_v28 = vld [vmem:[#allocation3 + $0x30] sm:$0xff] }
  0xe8   : > { %v657_v43 = vmul.f32 2.0, %v1512_v33  ;;  %v1783_v6 = vpop.eup %1782  ;;  %v658_v46 = vmul.f32 2.0, %v1513_v40  ;;  %v1521_v47 = vadd.f32 -1.0, %v2245_v45  ;;  %v723_v50 = vmul.f32 2.0, %v1520_v21 }
  0xe9   : > { %v815_v29 = vpack.c.bf16 %v808_v37, %v807_v24  ;;  %v1785_v44 = vpop.eup %1784  ;;  %v697_v51 = vmul.f32 %v1783_v6, %v2251_v49  ;;  %1794 = vpow2.f32 %v629_v42  ;;  %v631_v36 = vmul.f32 1.442695, %v616_v41 }
  0xea   : > { %v665_v52 = vmul.f32 %v657_v43, %v657_v43  ;;  %v1787_v17 = vpop.eup %1786  ;;  %v698_v34 = vmul.f32 %v1785_v44, %v2251_v49  ;;  %v666_v38 = vmul.f32 %v658_v46, %v658_v46  ;;  %v724_v53 = vmul.f32 2.0, %v1521_v47  ;;  %1021 = vmatpush.bf16.msra.mxu1 %v1636_v28  ;;  %v1645_v28 = vld [vmem:[%s2399_s6 + $0x38] sm:$0xff] }
  0xeb   : > { %891 = vmatmul.bf16.vlgmr.msra.gmra.mxu0 %v815_v29  ;;  %v731_v56 = vmul.f32 %v723_v50, %v723_v50  ;;  %v1789_v57 = vpop.eup %1788  ;;  %v793_v58 = vadd.f32 1.0, %v1787_v17  ;;  %v705_v60 = vadd.f32 %v697_v51, %v639_v16  ;;  %1796 = vpow2.f32 %v631_v36  ;;  %1157 = vmatpush.bf16.msra.mxu2 %v1645_v28 }
  0xec   : > { %v673_v61 = vsub.f32 0.0, %v665_v52  ;;  %v1791_v45 = vpop.eup %1790  ;;  %v706_v62 = vadd.f32 %v698_v34, %v640_v55  ;;  %v763_v35 = vmul.f32 %v1789_v57, %v2258_v59  ;;  %v674_v63 = vsub.f32 0.0, %v666_v38 }
  0xed   : > { %v732_v10 = vmul.f32 %v724_v53, %v724_v53  ;;  %v1793_v0 = vpop.eup %1792  ;;  %v794_v1 = vadd.f32 1.0, %v1791_v45  ;;  %v801_v2 = vmul.f32 0.5, %v793_v58  ;;  %v739_v39 = vsub.f32 0.0, %v731_v56  ;;  %v1635_v58 = vld [vmem:[#allocation3 + $0x28] sm:$0xff] }
  0xee   : > { %v687_v3 = vmul.f32 1.442695, %v673_v61  ;;  %v764_v4 = vmul.f32 %v1793_v0, %v2258_v59  ;;  %v771_v5 = vadd.f32 %v763_v35, %v705_v60  ;;  %v689_v7 = vmul.f32 1.442695, %v674_v63  ;;  %1022 = vmatpush.bf16.msra.mxu1 %v1635_v58  ;;  %v1634_v60 = vld [vmem:[#allocation3 + $0x20] sm:$0xff]  ;;  %v1633_v61 = vld [vmem:[#allocation3 + $0x18] sm:$0xff] }
  0xef   : > { %v740_v8 = vsub.f32 0.0, %v732_v10  ;;  %v1795_v9 = vpop.eup %1794  ;;  %v802_v48 = vmul.f32 0.5, %v794_v1  ;;  %v753_v12 = vmul.f32 1.442695, %v739_v39  ;;  %v809_v16 = vmul.f32 %v801_v2, %v2285_v11  ;;  %v1632_v35 = vld [vmem:[#allocation3 + $0x10] sm:$0xff]  ;;  %v1631_v63 = vld [vmem:[#allocation3 + $0x8] sm:$0xff] }
  0xf0   : > { %1798 = vpow2.f32 %v687_v3  ;;  %v772_v13 = vadd.f32 %v764_v4, %v706_v62  ;;  %v779_v14 = vmul.f32 0.5, %v771_v5  ;;  %v641_v23 = vmul.f32 %v1795_v9, %v2230_v32  ;;  %v1630_v1 = vld [vmem:[#allocation3] sm:$0xff] }
  0xf1   : > { %1800 = vpow2.f32 %v689_v7  ;;  %v1797_v15 = vpop.eup %1796  ;;  %v810_v54 = vmul.f32 %v802_v48, %v2288_v22  ;;  %v755_v18 = vmul.f32 1.442695, %v740_v8  ;;  %v1639_v58 = vld [vmem:[%s2399_s6 + $0x8] sm:$0xff]  ;;  %vm1208_vm2 = vcmask 31744  }
  0xf2   : > { %1802 = vpow2.f32 %v753_v12  ;;  %v780_v19 = vmul.f32 0.5, %v772_v13  ;;  %v642_v55 = vmul.f32 %v1797_v15, %v2230_v32  ;;  %1023 = vmatpush.bf16.msra.mxu1 %v1634_v60  ;;  %vm1210_vm3 = vcmask 64512  }
  0xf3   : > { %1804 = vtanh.f32 %v779_v14  ;;  %v816_v20 = vpack.c.bf16 %v810_v54, %v809_v16  ;;  %vm1212_vm4 = vcmask 97280   ;;  %vm1214_vm5 = vcmask 130048  }
  0xf4   : > { %1806 = vpow2.f32 %v755_v18  ;;  %vm1216_vm6 = vcmask 162816   ;;  %vm1218_vm7 = vcmask 195584   ;;  %vm1220_vm8 = vcmask 228352  }
  0xf5   : > { %1808 = vtanh.f32 %v780_v19  ;;  %896 = vmatmul.bf16.vlgmr.msra.gmra.mxu3 %v816_v20  ;;  %vm1230_vm9 = vcmask 261120   ;;  %vm1300_vm10 = vcmask 1041409   ;;  %vm1302_vm11 = vcmask 1042434  }
  0xf6   : > { %v1799_v24 = vpop.eup %1798  ;;  %1024 = vmatpush.bf16.msra.mxu1 %v1633_v61  ;;  %vm1304_vm12 = vcmask 1043459   ;;  %vm1306_vm13 = vcmask 1044484   ;;  %vm1308_vm14 = vcmask 1045509   ;;  %vm1310_vm15 = vcmask 1046534  }
  0xf7   : > { %v1801_v26 = vpop.eup %1800  ;;  %v699_v27 = vmul.f32 %v1799_v24, %v2251_v49  ;;  %vm1312_vm0 = vcmask 1047559  }
  0xf8   : > { %v1803_v11 = vpop.eup %1802  ;;  %v700_v22 = vmul.f32 %v1801_v26, %v2251_v49 }
  0xf9   : > { %v1805_v30 = vpop.eup %1804  ;;  %v707_v31 = vadd.f32 %v699_v27, %v641_v23  ;;  %v765_v33 = vmul.f32 %v1803_v11, %v2258_v59 }
  0xfa   : > { %v1807_v37 = vpop.eup %1806  ;;  %v795_v40 = vadd.f32 1.0, %v1805_v30  ;;  %v708_v21 = vadd.f32 %v700_v22, %v642_v55  ;;  %1025 = vmatpush.bf16.msra.mxu1 %v1632_v35 }
  0xfb   : > { %v1809_v41 = vpop.eup %1808  ;;  %v766_v42 = vmul.f32 %v1807_v37, %v2258_v59  ;;  %v773_v32 = vadd.f32 %v765_v33, %v707_v31  ;;  %v1644_v31 = vld [vmem:[%s2399_s6 + $0x30] sm:$0xff] }
  0xfc   : > { %v796_v43 = vadd.f32 1.0, %v1809_v41  ;;  %v803_v46 = vmul.f32 0.5, %v795_v40  ;;  %1158 = vmatpush.bf16.msra.mxu2 %v1644_v31 }
  0xfd   : > { %v774_v6 = vadd.f32 %v766_v42, %v708_v21  ;;  %v781_v29 = vmul.f32 0.5, %v773_v32 }
  0xfe   : > { %v804_v47 = vmul.f32 0.5, %v796_v43  ;;  %v811_v44 = vmul.f32 %v803_v46, %v771_v5  ;;  %1026 = vmatpush.bf16.msra.mxu1 %v1631_v63 }
  0xff   : > { %v782_v49 = vmul.f32 0.5, %v774_v6  ;;  %1810 = vtanh.f32 %v781_v29 }
 0x100   : > { %v812_v50 = vmul.f32 %v804_v47, %v772_v13 }
 0x101   : > { %1812 = vtanh.f32 %v782_v49 }
 0x102   : > { %v817_v51 = vpack.c.bf16 %v812_v50, %v811_v44  ;;  %1027 = vmatpush.bf16.msra.mxu1 %v1630_v1 }
 0x105   : > { %v1811_v36 = vpop.eup %1810  ;;  %901 = vmatmul.bf16.gmra.mxu3 %v817_v51 }
 0x106   : > { %v797_v34 = vadd.f32 1.0, %v1811_v36 }
 0x107   : > { %v1813_v52 = vpop.eup %1812 }
 0x108   : > { %v798_v17 = vadd.f32 1.0, %v1813_v52  ;;  %v805_v59 = vmul.f32 0.5, %v797_v34 }
 0x10a   : > { %v806_v38 = vmul.f32 0.5, %v798_v17  ;;  %v813_v56 = vmul.f32 %v805_v59, %v773_v32  ;;  %v1643_v59 = vld [vmem:[%s2399_s6 + $0x28] sm:$0xff] }
 0x10b   : > { %1159 = vmatpush.bf16.msra.mxu2 %v1643_v59 }
 0x10c   : > { %v814_v53 = vmul.f32 %v806_v38, %v774_v6 }
 0x10e   : > { %v818_v57 = vpack.c.bf16 %v814_v53, %v813_v56  ;;  %v1642_v53 = vld [vmem:[%s2399_s6 + $0x20] sm:$0xff]  ;;  %v1641_v56 = vld [vmem:[%s2399_s6 + $0x18] sm:$0xff] }
 0x10f   : > { %1160 = vmatpush.bf16.msra.mxu2 %v1642_v53 }
 0x113   : > { %1161 = vmatpush.bf16.msra.mxu2 %v1641_v56 }
 0x115   : > { %906 = vmatmul.bf16.gmra.mxu3 %v818_v57  ;;  %v1640_v57 = vld [vmem:[%s2399_s6 + $0x10] sm:$0xff] }
 0x117   : > { %1162 = vmatpush.bf16.msra.mxu2 %v1640_v57 }
 0x11b   : > { %1163 = vmatpush.bf16.msra.mxu2 %v1639_v58 }
 0x168   : > { %v892_v45 = vpop.f32.mrf.mxu0 }
 0x169   : > { %v912_v62 = vmul.f32 0.5, %v892_v45 }
 0x16b   : > { %1814 = vtanh.f32 %v912_v62  ;;  %v2336_v62 = vld [vmem:[%s2084_s28] sm:$0xff]  ;;  %s1947_s28 = smov 16  }
 0x16c   : > { %1190 = vrot.lane.b32.xlu0 %v2336_v62, %s1942_s12  ;;  %1193 = vrot.lane.b32.xlu1 %v2336_v62, %s1943_s17 }
 0x16d   : > { %1187 = vrot.lane.b32.xlu2 %v2336_v62, %s1944_s18 }
 0x170   : > { %v894_v10 = vpop.f32.mrf.mxu0 }
 0x171   : > { %v913_v0 = vmul.f32 0.5, %v894_v10  ;;  %v1815_v2 = vpop.eup %1814 }
 0x172   : > { %v928_v3 = vadd.f32 1.0, %v1815_v2 }
 0x173   : > { %1816 = vtanh.f32 %v913_v0 }
 0x174   : > { %v936_v5 = vmul.f32 0.5, %v928_v3  ;;  %1199 = vrot.lane.b32.xlu0 %v2336_v62, %s1945_s19  ;;  %1205 = vrot.lane.b32.xlu1 %v2336_v62, %s1946_s16 }
 0x175   : > { %1196 = vrot.lane.b32.xlu2 %v2336_v62, %s1947_s28 }
 0x176   : > { %v944_v48 = vmul.f32 %v936_v5, %v892_v45  ;;  %v1638_v45 = vld [vmem:[%s2399_s6] sm:$0xff] }
 0x177   : > { %1164 = vmatpush.bf16.msra.mxu2 %v1638_v45 }
 0x178   : > { %v897_v4 = vpop.f32.mrf.mxu3 }
 0x179   : > { %v1817_v39 = vpop.eup %1816  ;;  %v914_v8 = vmul.f32 0.5, %v897_v4 }
 0x17a   : > { %v929_v7 = vadd.f32 1.0, %v1817_v39 }
 0x17b   : > { %1818 = vtanh.f32 %v914_v8 }
 0x17c   : > { %v937_v9 = vmul.f32 0.5, %v929_v7 }
 0x17d   : > { %1202 = vrot.lane.b32.xlu2 %v2336_v62, %s1948_s20 }
 0x17e   : > { %v945_v12 = vmul.f32 %v937_v9, %v894_v10 }
 0x180   : > { %v952_v13 = vpack.c.bf16 %v945_v12, %v944_v48  ;;  %v899_v14 = vpop.f32.mrf.mxu3 }
 0x181   : > { %v915_v15 = vmul.f32 0.5, %v899_v14  ;;  %v1819_v16 = vpop.eup %1818 }
 0x182   : > { %1028 = vmatmul.bf16.vlgmr.msra.gmra.mxu1 %v952_v13  ;;  %v930_v54 = vadd.f32 1.0, %v1819_v16 }
 0x183   : > { %1820 = vtanh.f32 %v915_v15 }
 0x184   : > { %v938_v23 = vmul.f32 0.5, %v930_v54 }
 0x186   : > { %v946_v25 = vmul.f32 %v938_v23, %v897_v4 }
 0x188   : > { %v902_v18 = vpop.f32.mrf.mxu3 }
 0x189   : > { %v1821_v19 = vpop.eup %1820  ;;  %v916_v20 = vmul.f32 0.5, %v902_v18 }
 0x18a   : > { %v931_v24 = vadd.f32 1.0, %v1821_v19 }
 0x18b   : > { %1822 = vtanh.f32 %v916_v20 }
 0x18c   : > { %v939_v55 = vmul.f32 0.5, %v931_v24 }
 0x18e   : > { %v947_v26 = vmul.f32 %v939_v55, %v899_v14 }
 0x190   : > { %v904_v27 = vpop.f32.mrf.mxu3  ;;  %v953_v11 = vpack.c.bf16 %v947_v26, %v946_v25 }
 0x191   : > { %v917_v22 = vmul.f32 0.5, %v904_v27  ;;  %v1823_v30 = vpop.eup %1822 }
 0x192   : > { %1033 = vmatmul.bf16.gmra.mxu1 %v953_v11  ;;  %v932_v33 = vadd.f32 1.0, %v1823_v30 }
 0x193   : > { %1824 = vtanh.f32 %v917_v22 }
 0x194   : > { %v940_v41 = vmul.f32 0.5, %v932_v33 }
 0x196   : > { %v948_v43 = vmul.f32 %v940_v41, %v902_v18 }
 0x198   : > { %v907_v37 = vpop.f32.mrf.mxu3 }
 0x199   : > { %v1825_v40 = vpop.eup %1824  ;;  %v918_v21 = vmul.f32 0.5, %v907_v37 }
 0x19a   : > { %v933_v42 = vadd.f32 1.0, %v1825_v40 }
 0x19b   : > { %1826 = vtanh.f32 %v918_v21 }
 0x19c   : > { %v941_v32 = vmul.f32 0.5, %v933_v42 }
 0x19e   : > { %v949_v6 = vmul.f32 %v941_v32, %v904_v27 }
 0x1a0   : > { %v909_v29 = vpop.f32.mrf.mxu3  ;;  %v954_v46 = vpack.c.bf16 %v949_v6, %v948_v43 }
 0x1a1   : > { %v919_v47 = vmul.f32 0.5, %v909_v29  ;;  %v1827_v49 = vpop.eup %1826 }
 0x1a2   : > { %1038 = vmatmul.bf16.gmra.mxu1 %v954_v46  ;;  %v934_v50 = vadd.f32 1.0, %v1827_v49 }
 0x1a3   : > { %1828 = vtanh.f32 %v919_v47 }
 0x1a4   : > { %v942_v51 = vmul.f32 0.5, %v934_v50 }
 0x1a6   : > { %v950_v17 = vmul.f32 %v942_v51, %v907_v37 }
 0x1a9   : > { %v1829_v44 = vpop.eup %1828 }
 0x1aa   : > { %v935_v36 = vadd.f32 1.0, %v1829_v44 }
 0x1ac   : > { %v943_v52 = vmul.f32 0.5, %v935_v36 }
 0x1ae   : > { %v951_v34 = vmul.f32 %v943_v52, %v909_v29 }
 0x1b0   : > { %v955_v38 = vpack.c.bf16 %v951_v34, %v950_v17  ;;  %v1291_v34 = vld [vmem:[%s2400_s7 + $0x18] sm:$0xff] }
 0x1b1   : > { %1328 = vmatpush.msrb.mxu3 %v1291_v34 }
 0x1b2   : > { %1043 = vmatmul.bf16.gmra.mxu1 %v955_v38  ;;  %v1290_v38 = vld [vmem:[%s2400_s7 + $0x10] sm:$0xff] }
 0x1b3   : > { %1329 = vmatpush.msrb.mxu3 %v1290_v38 }
 0x1c7   : > { %v1188_v17 = vpop.permute.xlu2 %1187 }
 0x1c8   : > { %v1209_v53 = vsel %vm1208_vm2, %v2336_v62, %v1188_v17  ;;  %v1289_v62 = vld [vmem:[%s2400_s7 + $0x8] sm:$0xff] }
 0x1c9   : > { %1330 = vmatpush.msrb.mxu3 %v1289_v62 }
 0x1cf   : > { %v1197_v57 = vpop.permute.xlu2 %1196 }
 0x1de   : > { %v1191_v59 = vpop.permute.xlu0 %1190 }
 0x1df   : > { %v1211_v58 = vsel %vm1210_vm3, %v1209_v53, %v1191_v59 }
 0x1ff   : > { %v1029_v60 = vpop.f32.mrf.mxu1 }
 0x200   : > { %v1049_v61 = vmul.f32 0.5, %v1029_v60 }
 0x202   : > { %1830 = vtanh.f32 %v1049_v61 }
 0x207   : > { %v1031_v35 = vpop.f32.mrf.mxu1 }
 0x208   : > { %v1050_v63 = vmul.f32 0.5, %v1031_v35  ;;  %v1831_v10 = vpop.eup %1830 }
 0x209   : > { %v1065_v0 = vadd.f32 1.0, %v1831_v10 }
 0x20a   : > { %1832 = vtanh.f32 %v1050_v63  ;;  %v1200_v63 = vpop.permute.xlu0 %1199 }
 0x20b   : > { %v1073_v3 = vmul.f32 0.5, %v1065_v0  ;;  %v1203_v0 = vpop.permute.xlu2 %1202 }
 0x20d   : > { %v1081_v7 = vmul.f32 %v1073_v3, %v1029_v60  ;;  %v1194_v60 = vpop.permute.xlu1 %1193 }
 0x20e   : > { %v1213_v61 = vsel %vm1212_vm4, %v1211_v58, %v1194_v60 }
 0x20f   : > { %v1034_v2 = vpop.f32.mrf.mxu1 }
 0x210   : > { %v1833_v1 = vpop.eup %1832  ;;  %v1051_v4 = vmul.f32 0.5, %v1034_v2 }
 0x211   : > { %v1066_v39 = vadd.f32 1.0, %v1833_v1 }
 0x212   : > { %1834 = vtanh.f32 %v1051_v4 }
 0x213   : > { %v1074_v5 = vmul.f32 0.5, %v1066_v39 }
 0x215   : > { %v1082_v8 = vmul.f32 %v1074_v5, %v1031_v35  ;;  %v1215_v35 = vsel %vm1214_vm5, %v1213_v61, %v1197_v57 }
 0x216   : > { %v1217_v10 = vsel %vm1216_vm6, %v1215_v35, %v1200_v63 }
 0x217   : > { %v1089_v9 = vpack.c.bf16 %v1082_v8, %v1081_v7  ;;  %v1036_v48 = vpop.f32.mrf.mxu1  ;;  %v1219_v1 = vsel %vm1218_vm7, %v1217_v10, %v1203_v0 }
 0x218   : > { %v1052_v12 = vmul.f32 0.5, %v1036_v48  ;;  %v1835_v13 = vpop.eup %1834 }
 0x219   : > { %1165 = vmatmul.bf16.vlgmr.msra.gmra.mxu2 %v1089_v9  ;;  %v1067_v14 = vadd.f32 1.0, %v1835_v13 }
 0x21a   : > { %1836 = vtanh.f32 %v1052_v12 }
 0x21b   : > { %v1075_v18 = vmul.f32 0.5, %v1067_v14 }
 0x21d   : > { %v1083_v23 = vmul.f32 %v1075_v18, %v1034_v2  ;;  %v1206_v2 = vpop.permute.xlu1 %1205 }
 0x21e   : > { %v1221_v39 = vsel %vm1220_vm8, %v1219_v1, %v1206_v2 }
 0x21f   : > { %v1039_v15 = vpop.f32.mrf.mxu1 }
 0x220   : > { %v1837_v16 = vpop.eup %1836  ;;  %v1053_v54 = vmul.f32 0.5, %v1039_v15 }
 0x221   : > { %v1068_v19 = vadd.f32 1.0, %v1837_v16 }
 0x222   : > { %1838 = vtanh.f32 %v1053_v54 }
 0x223   : > { %v1076_v20 = vmul.f32 0.5, %v1068_v19 }
 0x225   : > { %v1084_v24 = vmul.f32 %v1076_v20, %v1036_v48  ;;  %v1288_v48 = vld [vmem:[%s2400_s7] sm:$0xff] }
 0x226   : > { %1331 = vmatpush.msrb.mxu3 %v1288_v48 }
 0x227   : > { %v1041_v55 = vpop.f32.mrf.mxu1  ;;  %v1090_v25 = vpack.c.bf16 %v1084_v24, %v1083_v23 }
 0x228   : > { %v1054_v26 = vmul.f32 0.5, %v1041_v55  ;;  %v1839_v27 = vpop.eup %1838 }
 0x229   : > { %1170 = vmatmul.bf16.gmra.mxu2 %v1090_v25  ;;  %v1069_v11 = vadd.f32 1.0, %v1839_v27 }
 0x22a   : > { %1840 = vtanh.f32 %v1054_v26 }
 0x22b   : > { %v1077_v31 = vmul.f32 0.5, %v1069_v11 }
 0x22d   : > { %v1085_v40 = vmul.f32 %v1077_v31, %v1039_v15 }
 0x22f   : > { %v1044_v22 = vpop.f32.mrf.mxu1 }
 0x230   : > { %v1841_v28 = vpop.eup %1840  ;;  %v1055_v30 = vmul.f32 0.5, %v1044_v22 }
 0x231   : > { %v1070_v33 = vadd.f32 1.0, %v1841_v28 }
 0x232   : > { %1842 = vtanh.f32 %v1055_v30 }
 0x233   : > { %v1078_v37 = vmul.f32 0.5, %v1070_v33 }
 0x235   : > { %v1086_v21 = vmul.f32 %v1078_v37, %v1041_v55 }
 0x237   : > { %v1046_v41 = vpop.f32.mrf.mxu1  ;;  %v1091_v42 = vpack.c.bf16 %v1086_v21, %v1085_v40 }
 0x238   : > { %v1056_v32 = vmul.f32 0.5, %v1046_v41  ;;  %v1843_v43 = vpop.eup %1842 }
 0x239   : > { %1175 = vmatmul.bf16.gmra.mxu2 %v1091_v42  ;;  %v1071_v6 = vadd.f32 1.0, %v1843_v43 }
 0x23a   : > { %1844 = vtanh.f32 %v1056_v32 }
 0x23b   : > { %v1079_v46 = vmul.f32 0.5, %v1071_v6 }
 0x23d   : > { %v1087_v50 = vmul.f32 %v1079_v46, %v1044_v22 }
 0x240   : > { %v1845_v29 = vpop.eup %1844 }
 0x241   : > { %v1072_v47 = vadd.f32 1.0, %v1845_v29 }
 0x243   : > { %v1080_v49 = vmul.f32 0.5, %v1072_v47 }
 0x245   : > { %v1088_v44 = vmul.f32 %v1080_v49, %v1046_v41 }
 0x247   : > { %v1092_v51 = vpack.c.bf16 %v1088_v44, %v1087_v50 }
 0x249   : > { %1180 = vmatmul.bf16.gmra.mxu2 %v1092_v51 }
 0x29c   : > { %v1166_v36 = vpop.f32.mrf.mxu2 }
 0x29d   : > { %v1222_v7 = vmul.f32 %v1221_v39, %v1166_v36 }
 0x29f   : > { %v1231_v15 = vsel %vm1230_vm9, %v1222_v7, 0.0 }
 0x2a0   : > { %v1232_v24 = vrot.slane %v1231_v15, 4 }
 0x2a2   : > { %v1233_v22 = vadd.f32 %v1232_v24, %v1231_v15 }
 0x2a4   : > { %v1168_v52 = vpop.f32.mrf.mxu2  ;;  %v1234_v42 = vrot.slane %v1233_v22, 2 }
 0x2a5   : > { %v1223_v4 = vmul.f32 %v1221_v39, %v1168_v52 }
 0x2a6   : > { %v1235_v50 = vadd.f32 %v1234_v42, %v1233_v22 }
 0x2a7   : > { %v1238_v12 = vsel %vm1230_vm9, %v1223_v4, 0.0 }
 0x2a8   : > { %v1239_v18 = vrot.slane %v1238_v12, 4  ;;  %v1236_v57 = vrot.slane %v1235_v50, 1 }
 0x2aa   : > { %v1240_v26 = vadd.f32 %v1239_v18, %v1238_v12  ;;  %v1237_v62 = vadd.f32 %v1236_v57, %v1235_v50 }
 0x2ac   : > { %v1171_v56 = vpop.f32.mrf.mxu2  ;;  %v1241_v37 = vrot.slane %v1240_v26, 2 }
 0x2ad   : > { %v1224_v5 = vmul.f32 %v1221_v39, %v1171_v56 }
 0x2ae   : > { %v1242_v29 = vadd.f32 %v1241_v37, %v1240_v26 }
 0x2af   : > { %v1245_v13 = vsel %vm1230_vm9, %v1224_v5, 0.0 }
 0x2b0   : > { %v1246_v20 = vrot.slane %v1245_v13, 4  ;;  %v1243_v34 = vrot.slane %v1242_v29, 1 }
 0x2b2   : > { %v1247_v11 = vadd.f32 %v1246_v20, %v1245_v13 }
 0x2b4   : > { %v1173_v45 = vpop.f32.mrf.mxu2  ;;  %v1248_v21 = vrot.slane %v1247_v11, 2 }
 0x2b5   : > { %v1225_v8 = vmul.f32 %v1221_v39, %v1173_v45  ;;  %v1244_v45 = vadd.f32 %v1243_v34, %v1242_v29 }
 0x2b6   : > { %v1249_v49 = vadd.f32 %v1248_v21, %v1247_v11 }
 0x2b7   : > { %v1252_v16 = vsel %vm1230_vm9, %v1225_v8, 0.0 }
 0x2b8   : > { %v1253_v55 = vrot.slane %v1252_v16, 4  ;;  %v1250_v59 = vrot.slane %v1249_v49, 1 }
 0x2ba   : > { %v1254_v28 = vadd.f32 %v1253_v55, %v1252_v16  ;;  %v1251_v10 = vadd.f32 %v1250_v59, %v1249_v49 }
 0x2bc   : > { %v1176_v3 = vpop.f32.mrf.mxu2  ;;  %v1255_v32 = vrot.slane %v1254_v28, 2 }
 0x2bd   : > { %v1226_v9 = vmul.f32 %v1221_v39, %v1176_v3 }
 0x2be   : > { %v1256_v44 = vadd.f32 %v1255_v32, %v1254_v28 }
 0x2bf   : > { %v1259_v19 = vsel %vm1230_vm9, %v1226_v9, 0.0 }
 0x2c0   : > { %v1260_v25 = vrot.slane %v1259_v19, 4  ;;  %v1257_v58 = vrot.slane %v1256_v44, 1 }
 0x2c2   : > { %v1261_v31 = vadd.f32 %v1260_v25, %v1259_v19  ;;  %v1258_v1 = vadd.f32 %v1257_v58, %v1256_v44 }
 0x2c4   : > { %v1178_v14 = vpop.f32.mrf.mxu2  ;;  %v1262_v6 = vrot.slane %v1261_v31, 2 }
 0x2c5   : > { %v1227_v54 = vmul.f32 %v1221_v39, %v1178_v14 }
 0x2c6   : > { %v1263_v52 = vadd.f32 %v1262_v6, %v1261_v31 }
 0x2c7   : > { %v1266_v23 = vsel %vm1230_vm9, %v1227_v54, 0.0  ;;  %v1287_v54 = vld [vmem:[#allocation2] sm:$0xff] }
 0x2c8   : > { %v1267_v27 = vrot.slane %v1266_v23, 4  ;;  %v1264_v61 = vrot.slane %v1263_v52, 1 }
 0x2ca   : > { %v1268_v40 = vadd.f32 %v1267_v27, %v1266_v23  ;;  %v1265_v3 = vadd.f32 %v1264_v61, %v1263_v52 }
 0x2cc   : > { %v1181_v30 = vpop.f32.mrf.mxu2  ;;  %v1269_v46 = vrot.slane %v1268_v40, 2 }
 0x2cd   : > { %v1228_v33 = vmul.f32 %v1221_v39, %v1181_v30 }
 0x2ce   : > { %v1270_v38 = vadd.f32 %v1269_v46, %v1268_v40 }
 0x2cf   : > { %v1273_v41 = vsel %vm1230_vm9, %v1228_v33, 0.0 }
 0x2d0   : > { %v1274_v43 = vrot.slane %v1273_v41, 4  ;;  %v1271_v35 = vrot.slane %v1270_v38, 1 }
 0x2d2   : > { %v1275_v47 = vadd.f32 %v1274_v43, %v1273_v41  ;;  %v1272_v4 = vadd.f32 %v1271_v35, %v1270_v38 }
 0x2d4   : > { %v1276_v51 = vrot.slane %v1275_v47, 2  ;;  %v1183_v36 = vpop.f32.mrf.mxu2 }
 0x2d5   : > { %v1229_v17 = vmul.f32 %v1221_v39, %v1183_v36  ;;  %v1301_v39 = vsel %vm1300_vm10, %v1244_v45, %v1237_v62 }
 0x2d6   : > { %v1277_v53 = vadd.f32 %v1276_v51, %v1275_v47  ;;  %v1303_v7 = vsel %vm1302_vm11, %v1251_v10, %v1301_v39 }
 0x2d7   : > { %v1280_v56 = vsel %vm1230_vm9, %v1229_v17, 0.0  ;;  %v1305_v9 = vsel %vm1304_vm12, %v1258_v1, %v1303_v7 }
 0x2d8   : > { %v1281_v60 = vrot.slane %v1280_v56, 4  ;;  %v1278_v0 = vrot.slane %v1277_v53, 1  ;;  %v1307_v12 = vsel %vm1306_vm13, %v1265_v3, %v1305_v9 }
 0x2d9   : > { %v1309_v14 = vsel %vm1308_vm14, %v1272_v4, %v1307_v12 }
 0x2da   : > { %v1282_v63 = vadd.f32 %v1281_v60, %v1280_v56  ;;  %v1279_v8 = vadd.f32 %v1278_v0, %v1277_v53 }
 0x2dc   : > { %v1283_v2 = vrot.slane %v1282_v63, 2  ;;  %v1311_v15 = vsel %vm1310_vm15, %v1279_v8, %v1309_v14 }
 0x2de   : > { %v1284_v5 = vadd.f32 %v1283_v2, %v1282_v63 }
 0x2e0   : > { %v1285_v48 = vrot.slane %v1284_v5, 1 }
 0x2e2   : > { %v1286_v13 = vadd.f32 %v1285_v48, %v1284_v5 }
 0x2e4   : > { %v1313_v16 = vsel %vm1312_vm0, %v1286_v13, %v1311_v15 }
 0x2e5   : > { %1618 = vmatmul.msk.f32.vlgmr.msrb.gmra.mxu3 %vm1230_vm9, %v1313_v16 }
 0x367   : > { %1341 = sbr.rel (%p1619_p13) target bundleno = 899 (0x383), region = 64 }
 0x368   : > { %v1333_v18 = vpop.f32.mrf.mxu3 }
 0x369   : > { %v1336_v19 = vadd.f32 %v1333_v18, %v1287_v54 }
 0x36b   : > { %1337 = vst.msk [vmem:[#allocation2] sm:$0xff] %vm1210_vm3, %v1336_v19 }
 0x372   : > { %v1342_v20 = vld [vmem:[#allocation2] sm:$0xff] }
 0x373   : > { %v1343_v23 = vmul.f32 0.5, %v1342_v20 }
 0x375   : > { %1846 = vtanh.f32 %v1343_v23 }
 0x37b   : > { %v1847_v24 = vpop.eup %1846 }
 0x37c   : > { %v1345_v55 = vadd.f32 1.0, %v1847_v24 }
 0x37e   : > { %v1346_v25 = vmul.f32 0.5, %v1345_v55 }
 0x380   : > { %v1347_v26 = vmul.f32 %v1346_v25, %v1342_v20 }
 0x382   : > { %1348 = vst.msk [vmem:[%s2075_s21] sm:$0xff] %vm1210_vm3, %v1347_v26 }
 0x383 PF: > { %s19_s11 = sadd.s32 1, %s1936_s11   ;;  %s2409_s25 = sld [smem:[#allocation6_spill]] }
 0x384   : > { %p16_p0 = scmp.ge.s32.totalorder %s19_s11, 10   ;;  %s2410_s26 = sld [smem:[#allocation7_spill]] }
 0x385   : > { %s2411_s12 = sld [smem:[#allocation8_spill]]  ;;  %s2412_s27 = smov %s1924_s30 }
 0x386   : > { %s2413_s28 = smov %s1928_s9  ;;  %s2414_s29 = smov %s1932_s10 }
 0x387   :  { %18 = sbr.rel (!%p16_p0) target bundleno = 6 (0x6), region = 101 }
 0x389   : > { %s2415_s30 = smov %s2409_s25 }
 0x38a   : > { %s2416_s9 = smov %s2410_s26 }
 0x38b   : > { %s2417_s10 = smov %s2411_s12 }
 0x38c   :  { %1376 = vsyncpa [#allocation4], 1 }
 0x38d   :  { %1378 = vsyncpa [#allocation4 + $0x1], 1 }

</bundles_post_ra>
